<compile_context>
chip_gen: v7x
topology: tpu7x:2x2x1
jax: 0.10.0
libtpu: 0.0.40
codegen_flags: <defaults>
</compile_context>

<pallas_src>
import functools

import numpy as np
import jax
import jax.numpy as jnp
from jax import lax
from jax.experimental import pallas as pl
from jax.experimental.pallas import tpu as pltpu

# ----------------------------- configuration --------------------------------
RGB_LATENT_SCALE = 0.18215
DEPTH_LATENT_SCALE = 0.18215
PATCH = 8          # VAE downsample factor (H/8, W/8 latents)
C_LAT = 4          # latent channels
C_MODEL = 32       # UNet hidden channels
D_TXT = 32         # text-embedding dim
S_TXT = 8          # text sequence length
T_EMB = 32         # timestep embedding dim
DEC_PAD = 128      # lane-dense decoder output width (first PATCH*PATCH cols used)
N_TAPS = 9         # 3x3 conv taps


# ============================ in-kernel helpers ==============================
def _bf(x):
    return x.astype(jnp.bfloat16)


def _mxdot(a, b):
    """MXU matmul: bf16 operands, f32 accumulation."""
    return jnp.dot(_bf(a), _bf(b), preferred_element_type=jnp.float32)


def _roll_tokens(x, shift):
    """Cyclic roll along the token (sublane) axis; shift is a static int."""
    if shift == 0:
        return x
    return pltpu.roll(x, shift=shift, axis=0)


# ============================ fused Pallas kernel ============================
def _pipeline_kernel(patches_ref, noise_ref, masks_ref, coefs_ref, biases_ref,
                     text_ref, enc_w_ref, enc_b_ref,
                     w_in_rgb_ref, w_in_dep_ref,
                     wq_ref, wkv_ref, wo_ref,
                     w_out_ref, conv_out_b_ref,
                     dec_w_ref, dec_b_ref,
                     out_ref, *, shifts, num_steps, att_scale):
    # ---------------- hoisted, loop-invariant work (once per image) ----------
    # "VAE" encoder: 8x8x3 patches -> 4-ch rgb latent, * 0.18215 (MXU, K=192)
    rgb_lat = (_mxdot(patches_ref[...], enc_w_ref[...])
               + enc_b_ref[...]) * RGB_LATENT_SCALE              # (N, 4)

    # per-tap zero-padding masks, (N, 1) each, read once
    masks = [masks_ref[:, k:k + 1] for k in range(N_TAPS)]

    def expand_k4(x4, w_wide):
        # (N,4) x (4,W) contraction as 4 lane-dense VPU broadcast-FMAs (no MXU)
        acc = x4[:, 0:1] * w_wide[0:1, :]
        for c in range(1, C_LAT):
            acc = acc + x4[:, c:c + 1] * w_wide[c:c + 1, :]
        return acc

    def gather_taps(y_stacked, cout):
        # y_stacked[:, k*cout:(k+1)*cout] = x @ W_k.  3x3 "same" conv output is
        # sum_k mask_k * roll(slice_k): rolls go to the XLU slot, masks to VPU.
        acc = masks[0] * _roll_tokens(y_stacked[:, 0:cout], shifts[0])
        for k in range(1, N_TAPS):
            sl = y_stacked[:, k * cout:(k + 1) * cout]
            acc = acc + masks[k] * _roll_tokens(sl, shifts[k])
        return acc

    # rgb half of conv_in does not change across denoising steps -> hoisted
    rgb_conv = gather_taps(expand_k4(rgb_lat, w_in_rgb_ref[...]), C_MODEL)   # (N,32)

    # empty-text cross-attention, folded:
    #   s = h1 @ (wq k^T),  attn = softmax(s) @ (v wo)
    kv = _mxdot(text_ref[...], wkv_ref[...])                     # (S, 2*C_MODEL)
    k_txt = kv[:, :C_MODEL]                                      # (S, C_MODEL)
    v_txt = kv[:, C_MODEL:]                                      # (S, C_MODEL)
    a_mat = lax.dot_general(_bf(wq_ref[...]), _bf(k_txt),
                            (((1,), (1,)), ((), ())),
                            preferred_element_type=jnp.float32)  # (C_MODEL, S)
    a_bf = _bf(a_mat * att_scale)          # fold 1/sqrt(d); bf16 cast hoisted
    b_mat = _mxdot(v_txt, wo_ref[...])     # (S, C_MODEL) f32, used by VPU FMAs

    w_dep = w_in_dep_ref[...]              # (4, 9*C_MODEL) f32, loop-invariant
    w_out_bf = _bf(w_out_ref[...])         # (C_MODEL, 9*C_LAT) bf16, hoisted cast
    b_out = conv_out_b_ref[...]            # (1, C_LAT)

    # ---------------- DDIM denoising loop (fori_loop, not unrolled) ----------
    def ddim_step(step, depth_lat):
        bias_row = biases_ref[pl.ds(step, 1), :]                 # (1, C_MODEL)
        # conv_in (3x3, 8ch -> C_MODEL): hoisted rgb half + per-step depth half
        h1 = (rgb_conv
              + gather_taps(expand_k4(depth_lat, w_dep), C_MODEL)
              + bias_row)
        h1 = h1 * jax.nn.sigmoid(h1)                             # SiLU, f32

        # single-head cross-attention against the shared empty-text embedding
        s = jnp.dot(_bf(h1), a_bf, preferred_element_type=jnp.float32)  # (N, S)
        s = s - jnp.max(s, axis=-1, keepdims=True)
        p = jnp.exp(s)
        p = p * pl.reciprocal(jnp.sum(p, axis=-1, keepdims=True))       # exact
        attn = p[:, 0:1] * b_mat[0:1, :]                          # K=S_TXT=8 as
        for j in range(1, S_TXT):                                 # VPU FMAs
            attn = attn + p[:, j:j + 1] * b_mat[j:j + 1, :]
        h2 = h1 + attn                                            # residual

        # conv_out (3x3, C_MODEL -> 4): ONE (N,32)@(32,36) MXU matmul + gather
        z = jnp.dot(_bf(h2), w_out_bf, preferred_element_type=jnp.float32)
        eps = gather_taps(z, C_LAT) + b_out                       # (N, 4)

        # DDIM (eta = 0) update: x_{t-1} = c1 * x_t + c2 * eps
        c = coefs_ref[pl.ds(step, 1), :]                          # (1, 2)
        return c[:, 0:1] * depth_lat + c[:, 1:2] * eps

    depth_lat = lax.fori_loop(0, num_steps, ddim_step, noise_ref[...])

    # ---------------- "VAE" decoder: (latent / 0.18215) -> 8x8 depth patch ---
    lat = depth_lat * (1.0 / DEPTH_LATENT_SCALE)
    dec = dec_b_ref[...] + expand_k4(lat, dec_w_ref[...])         # (N, DEC_PAD)
    out_ref[...] = dec.astype(out_ref.dtype)                      # unmasked, lane-dense


def run_pipeline(packed, patches, noise, coefs, biases, masks, shifts):
    """One pallas_call for the whole forward pass, gridded over batch images
    (independent work -> "parallel" -> both TCs on v7x).  All per-image tensors
    are KB-scale so full blocks live in VMEM."""
    B, n_tok, patch_dim = patches.shape
    num_steps = int(coefs.shape[0])
    kernel = functools.partial(
        _pipeline_kernel,
        shifts=tuple(int(s) for s in shifts),
        num_steps=num_steps,
        att_scale=1.0 / float(np.sqrt(C_MODEL)))

    def full(arr):
        nd = arr.ndim
        return pl.BlockSpec(arr.shape, lambda b, _nd=nd: (0,) * _nd)

    return pl.pallas_call(
        kernel,
        out_shape=jax.ShapeDtypeStruct((B, n_tok, DEC_PAD), jnp.float32),
        grid=(B,),
        in_specs=[
            pl.BlockSpec((None, n_tok, patch_dim), lambda b: (b, 0, 0)),
            pl.BlockSpec((None, n_tok, C_LAT), lambda b: (b, 0, 0)),
            full(masks), full(coefs), full(biases),
            full(packed["empty_text_embed"]),
            full(packed["enc_w"]), full(packed["enc_b"]),
            full(packed["w_in_rgb"]), full(packed["w_in_dep"]),
            full(packed["wq"]), full(packed["wkv"]), full(packed["wo"]),
            full(packed["w_out_wide"]), full(packed["conv_out_b"]),
            full(packed["dec_w"]), full(packed["dec_b"]),
        ],
        out_specs=pl.BlockSpec((None, n_tok, DEC_PAD), lambda b: (b, 0, 0)),
        compiler_params=pltpu.CompilerParams(
            dimension_semantics=("parallel",),      # batch across TCs on v7x
            vmem_limit_bytes=32 * 1024 * 1024),     # raise for much larger n_tok
    )(patches, noise, masks, coefs, biases,
      packed["empty_text_embed"], packed["enc_w"], packed["enc_b"],
      packed["w_in_rgb"], packed["w_in_dep"],
      packed["wq"], packed["wkv"], packed["wo"],
      packed["w_out_wide"], packed["conv_out_b"],
      packed["dec_w"], packed["dec_b"])


# ================================ glue =======================================
def patchify_rgb(rgb_nchw):
    """NCHW image -> (B, h*w, PATCH*PATCH*3) stride-8 patches (token = (y, x))."""
    B, C, H, W = rgb_nchw.shape
    x = jnp.transpose(rgb_nchw, (0, 2, 3, 1))                    # NHWC
    h, w = H // PATCH, W // PATCH
    patches = (x.reshape(B, h, PATCH, w, PATCH, C)
                .transpose(0, 1, 3, 2, 4, 5)
                .reshape(B, h * w, PATCH * PATCH * C))
    return patches, (B, h, w)


def unpatchify_depth(dec, B, h, w):
    """(B, h*w, DEC_PAD) decoded patches -> NCHW [B, 1, H, W] depth map."""
    d = dec[:, :, :PATCH * PATCH].reshape(B, h, w, PATCH, PATCH)
    depth = d.transpose(0, 1, 3, 2, 4).reshape(B, h * PATCH, w * PATCH)
    return depth[:, None, :, :]


def _conv_taps():
    return [(i - 1, j - 1) for i in range(3) for j in range(3)]


def make_tap_masks(h, w):
    """(h*w, 9) 0/1 masks: mask[t][token] = 1 iff the 3x3 tap t stays inside the
    image for that destination token ('same' conv zero padding)."""
    n = h * w
    m = np.zeros((n, N_TAPS), np.float32)
    for t, (di, dj) in enumerate(_conv_taps()):
        for y in range(h):
            for x in range(w):
                if 0 <= y + di < h and 0 <= x + dj < w:
                    m[y * w + x, t] = 1.0
    return jnp.asarray(m)


def make_tap_shifts(h, w):
    """Static roll amounts so that roll(x, shift_t)[i] == x[i + di*w + dj]."""
    n = h * w
    return tuple(int((-(di * w + dj)) % n) for (di, dj) in _conv_taps())


def timestep_embedding(t, dim):
    half = dim // 2
    freqs = jnp.exp(-jnp.log(10000.0) * jnp.arange(half, dtype=jnp.float32) / half)
    args = float(t) * freqs
    return jnp.concatenate([jnp.cos(args), jnp.sin(args)])


def conv_in_biases(params, timesteps):
    """Per-step timestep conditioning folded into the conv_in bias (tiny glue)."""
    rows = []
    for t in timesteps:
        temb = timestep_embedding(t, T_EMB)
        tproj = jax.nn.silu(temb @ params["time_w"] + params["time_b"])
        rows.append(params["conv_in_b"][0] + tproj)
    return jnp.stack(rows)                                        # (steps, C_MODEL)


def make_ddim_schedule(num_inference_steps, num_train_timesteps=1000):
    """SD scaled-linear beta schedule + DDIM timesteps & update coefficients
    (eta=0, set_alpha_to_one=True as in diffusers' DDIMScheduler default)."""
    betas = np.linspace(0.00085 ** 0.5, 0.012 ** 0.5, num_train_timesteps,
                        dtype=np.float64) ** 2
    alphas_cumprod = np.cumprod(1.0 - betas)
    step = num_train_timesteps // num_inference_steps
    timesteps = (np.arange(num_inference_steps) * step)[::-1].astype(int)
    coefs = []
    for t in timesteps:
        prev_t = t - step
        a_t = alphas_cumprod[t]
        a_prev = alphas_cumprod[prev_t] if prev_t >= 0 else 1.0   # set_alpha_to_one
        c1 = float(np.sqrt(a_prev / a_t))
        c2 = float(np.sqrt(1.0 - a_prev) - np.sqrt(a_prev * (1.0 - a_t) / a_t))
        coefs.append((int(t), c1, c2))
    return coefs


def init_params(key):
    def w(k, shape, s=0.1):
        return jax.random.normal(k, shape, jnp.float32) * s

    ks = jax.random.split(key, 12)
    dec_core = w(ks[8], (C_LAT, PATCH * PATCH))
    dec_w = jnp.zeros((C_LAT, DEC_PAD), jnp.float32).at[:, :PATCH * PATCH].set(dec_core)
    return {
        # "VAE encoder": 8x8x3 patch -> 4 latent channels
        "enc_w": w(ks[0], (PATCH * PATCH * 3, C_LAT)),
        "enc_b": jnp.zeros((1, C_LAT), jnp.float32),
        # UNet conv_in (replaced: 8 = 4 rgb + 4 depth latent channels), 3x3 taps
        "conv_in_w": w(ks[1], (N_TAPS, 2 * C_LAT, C_MODEL)),
        "conv_in_b": jnp.zeros((1, C_MODEL), jnp.float32),
        # timestep MLP
        "time_w": w(ks[2], (T_EMB, C_MODEL)),
        "time_b": jnp.zeros((C_MODEL,), jnp.float32),
        # cross-attention (k/v projections fused)
        "wq": w(ks[3], (C_MODEL, C_MODEL)),
        "wkv": w(ks[4], (D_TXT, 2 * C_MODEL)),
        "wo": w(ks[6], (C_MODEL, C_MODEL)),
        # UNet conv_out -> 4 latent channels (noise prediction), 3x3 taps
        "conv_out_w": w(ks[7], (N_TAPS, C_MODEL, C_LAT)),
        "conv_out_b": jnp.zeros((1, C_LAT), jnp.float32),
        # "VAE decoder": 4 latent channels -> 8x8 depth patch (padded to 128 lanes)
        "dec_w": dec_w,
        "dec_b": jnp.zeros((1, DEC_PAD), jnp.float32),
        # empty-text embedding (stand-in for CLIP('') output)
        "empty_text_embed": w(ks[9], (1, S_TXT, D_TXT), s=1.0),
    }


def pack_params(params):
    """Pack per-tap conv weights into the tap-stacked wide slabs the kernel uses:
    wide[:, k*Cout:(k+1)*Cout] = W_tap_k (Cin, Cout)."""
    w_in = params["conv_in_w"]                                    # (9, 8, 32)
    w_out = params["conv_out_w"]                                  # (9, 32, 4)
    return {
        "empty_text_embed": params["empty_text_embed"][0],        # (S_TXT, D_TXT)
        "enc_w": params["enc_w"], "enc_b": params["enc_b"],
        "w_in_rgb": jnp.transpose(w_in[:, :C_LAT, :], (1, 0, 2))
                       .reshape(C_LAT, N_TAPS * C_MODEL),
        "w_in_dep": jnp.transpose(w_in[:, C_LAT:, :], (1, 0, 2))
                       .reshape(C_LAT, N_TAPS * C_MODEL),
        "wq": params["wq"], "wkv": params["wkv"], "wo": params["wo"],
        "w_out_wide": jnp.transpose(w_out, (1, 0, 2))
                         .reshape(C_MODEL, N_TAPS * C_LAT),
        "conv_out_b": params["conv_out_b"],
        "dec_w": params["dec_w"], "dec_b": params["dec_b"],
    }


# ============================ full forward ===================================
def marigold_forward(params, rgb_in, *, num_inference_steps=4, noise_key=None):
    """Mirrors MarigoldPipeline.forward with num_output_inter_results=0."""
    patches, (B, h, w) = patchify_rgb(rgb_in)                     # (B, h*w, 192)
    n_tok = h * w
    depth_noise = jax.random.normal(noise_key, (B, n_tok, C_LAT), jnp.float32)

    sched = make_ddim_schedule(num_inference_steps)
    timesteps = [t for (t, _, _) in sched]
    coefs = jnp.asarray([(c1, c2) for (_, c1, c2) in sched], jnp.float32)  # (steps, 2)
    biases = conv_in_biases(params, timesteps)                    # (steps, C_MODEL)
    masks = make_tap_masks(h, w)                                  # (n_tok, 9)
    shifts = make_tap_shifts(h, w)                                # static ints
    packed = pack_params(params)

    dec = run_pipeline(packed, patches, depth_noise, coefs, biases, masks, shifts)
    return unpatchify_depth(dec, B, h, w)                         # NCHW [B, 1, H, W]


# ================================= main ======================================
if __name__ == "__main__":
    key = jax.random.PRNGKey(0)
    pkey, rkey, nkey = jax.random.split(key, 3)
    params = init_params(pkey)
    rgb_in = jax.random.normal(rkey, (2, 3, 32, 32), jnp.float32)   # NCHW input

    fwd = jax.jit(functools.partial(marigold_forward, num_inference_steps=4))
    depth = fwd(params, rgb_in, noise_key=nkey)
    jax.block_until_ready(depth)

    assert depth.shape == (2, 1, 32, 32), depth.shape
    assert bool(jnp.all(jnp.isfinite(depth)))
    print("KERNEL_OK")
</pallas_src>

<mosaic_0001>
module attributes {stable_mosaic.version = 11 : i64} {
  func.func @_pipeline_kernel(%arg0: i32, %arg1: memref<1x16x192xf32, #tpu.memory_space<vmem>>, %arg2: memref<1x16x4xf32, #tpu.memory_space<vmem>>, %arg3: memref<16x9xf32, #tpu.memory_space<vmem>>, %arg4: memref<4x2xf32, #tpu.memory_space<vmem>>, %arg5: memref<4x32xf32, #tpu.memory_space<vmem>>, %arg6: memref<8x32xf32, #tpu.memory_space<vmem>>, %arg7: memref<192x4xf32, #tpu.memory_space<vmem>>, %arg8: memref<1x4xf32, #tpu.memory_space<vmem>>, %arg9: memref<4x288xf32, #tpu.memory_space<vmem>>, %arg10: memref<4x288xf32, #tpu.memory_space<vmem>>, %arg11: memref<32x32xf32, #tpu.memory_space<vmem>>, %arg12: memref<32x64xf32, #tpu.memory_space<vmem>>, %arg13: memref<32x32xf32, #tpu.memory_space<vmem>>, %arg14: memref<32x36xf32, #tpu.memory_space<vmem>>, %arg15: memref<1x4xf32, #tpu.memory_space<vmem>>, %arg16: memref<4x128xf32, #tpu.memory_space<vmem>>, %arg17: memref<1x128xf32, #tpu.memory_space<vmem>>, %arg18: memref<1x16x128xf32, #tpu.memory_space<vmem>>) attributes {dimension_semantics = [#tpu.dimension_semantics<parallel>], iteration_bounds = array<i64: 2>, scalar_prefetch = 0 : i64, scratch_operands = 0 : i64, tpu.core_type = #tpu.core_type<tc>, window_params = [{transform_indices = @transform_0, window_bounds = array<i64: 1, 16, 192>}, {transform_indices = @transform_1, window_bounds = array<i64: 1, 16, 4>}, {pipeline_mode = #tpu.pipeline_mode<synchronous>, transform_indices = @transform_2, window_bounds = array<i64: 16, 9>}, {pipeline_mode = #tpu.pipeline_mode<synchronous>, transform_indices = @transform_3, window_bounds = array<i64: 4, 2>}, {pipeline_mode = #tpu.pipeline_mode<synchronous>, transform_indices = @transform_4, window_bounds = array<i64: 4, 32>}, {pipeline_mode = #tpu.pipeline_mode<synchronous>, transform_indices = @transform_5, window_bounds = array<i64: 8, 32>}, {pipeline_mode = #tpu.pipeline_mode<synchronous>, transform_indices = @transform_6, window_bounds = array<i64: 192, 4>}, {pipeline_mode = #tpu.pipeline_mode<synchronous>, transform_indices = @transform_7, window_bounds = array<i64: 1, 4>}, {pipeline_mode = #tpu.pipeline_mode<synchronous>, transform_indices = @transform_8, window_bounds = array<i64: 4, 288>}, {pipeline_mode = #tpu.pipeline_mode<synchronous>, transform_indices = @transform_9, window_bounds = array<i64: 4, 288>}, {pipeline_mode = #tpu.pipeline_mode<synchronous>, transform_indices = @transform_10, window_bounds = array<i64: 32, 32>}, {pipeline_mode = #tpu.pipeline_mode<synchronous>, transform_indices = @transform_11, window_bounds = array<i64: 32, 64>}, {pipeline_mode = #tpu.pipeline_mode<synchronous>, transform_indices = @transform_12, window_bounds = array<i64: 32, 32>}, {pipeline_mode = #tpu.pipeline_mode<synchronous>, transform_indices = @transform_13, window_bounds = array<i64: 32, 36>}, {pipeline_mode = #tpu.pipeline_mode<synchronous>, transform_indices = @transform_14, window_bounds = array<i64: 1, 4>}, {pipeline_mode = #tpu.pipeline_mode<synchronous>, transform_indices = @transform_15, window_bounds = array<i64: 4, 128>}, {pipeline_mode = #tpu.pipeline_mode<synchronous>, transform_indices = @transform_16, window_bounds = array<i64: 1, 128>}, {transform_indices = @transform_17, window_bounds = array<i64: 1, 16, 128>}]} {
    %c0 = arith.constant 0 : index
    %c0_0 = arith.constant 0 : index
    %c0_1 = arith.constant 0 : index
    %0 = vector.load %arg1[%c0, %c0_0, %c0_1] : memref<1x16x192xf32, #tpu.memory_space<vmem>>, vector<1x16x192xf32>
    %1 = vector.shape_cast %0 : vector<1x16x192xf32> to vector<16x192xf32>
    %c0_2 = arith.constant 0 : index
    %c0_3 = arith.constant 0 : index
    %2 = vector.load %arg7[%c0_2, %c0_3] : memref<192x4xf32, #tpu.memory_space<vmem>>, vector<192x4xf32>
    %3 = arith.truncf %1 : vector<16x192xf32> to vector<16x192xbf16>
    %4 = arith.truncf %2 : vector<192x4xf32> to vector<192x4xbf16>
    %cst = arith.constant dense<0.000000e+00> : vector<16x4xf32>
    %5 = tpu.matmul %3, %4, %cst {dimension_numbers = #tpu.dot_dimension_numbers<[1], [0], [0], [1], [0, 0, 1, 1], [], []>} : vector<16x192xbf16>, vector<192x4xbf16>, vector<16x4xf32> -> vector<16x4xf32>
    %c0_4 = arith.constant 0 : index
    %c0_5 = arith.constant 0 : index
    %6 = vector.load %arg8[%c0_4, %c0_5] : memref<1x4xf32, #tpu.memory_space<vmem>>, vector<1x4xf32>
    %7 = vector.broadcast %6 : vector<1x4xf32> to vector<16x4xf32>
    %8 = arith.addf %5, %7 : vector<16x4xf32>
    %cst_6 = arith.constant 1.821500e-01 : f32
    %9 = vector.broadcast %cst_6 : f32 to vector<16x4xf32>
    %10 = arith.mulf %8, %9 : vector<16x4xf32>
    %c0_7 = arith.constant 0 : index
    %c0_8 = arith.constant 0 : index
    %11 = vector.load %arg3[%c0_7, %c0_8] : memref<16x9xf32, #tpu.memory_space<vmem>>, vector<16x1xf32>
    %c0_9 = arith.constant 0 : index
    %c1 = arith.constant 1 : index
    %12 = vector.load %arg3[%c0_9, %c1] : memref<16x9xf32, #tpu.memory_space<vmem>>, vector<16x1xf32>
    %c0_10 = arith.constant 0 : index
    %c2 = arith.constant 2 : index
    %13 = vector.load %arg3[%c0_10, %c2] : memref<16x9xf32, #tpu.memory_space<vmem>>, vector<16x1xf32>
    %c0_11 = arith.constant 0 : index
    %c3 = arith.constant 3 : index
    %14 = vector.load %arg3[%c0_11, %c3] : memref<16x9xf32, #tpu.memory_space<vmem>>, vector<16x1xf32>
    %c0_12 = arith.constant 0 : index
    %c4 = arith.constant 4 : index
    %15 = vector.load %arg3[%c0_12, %c4] : memref<16x9xf32, #tpu.memory_space<vmem>>, vector<16x1xf32>
    %c0_13 = arith.constant 0 : index
    %c5 = arith.constant 5 : index
    %16 = vector.load %arg3[%c0_13, %c5] : memref<16x9xf32, #tpu.memory_space<vmem>>, vector<16x1xf32>
    %c0_14 = arith.constant 0 : index
    %c6 = arith.constant 6 : index
    %17 = vector.load %arg3[%c0_14, %c6] : memref<16x9xf32, #tpu.memory_space<vmem>>, vector<16x1xf32>
    %c0_15 = arith.constant 0 : index
    %c7 = arith.constant 7 : index
    %18 = vector.load %arg3[%c0_15, %c7] : memref<16x9xf32, #tpu.memory_space<vmem>>, vector<16x1xf32>
    %c0_16 = arith.constant 0 : index
    %c8 = arith.constant 8 : index
    %19 = vector.load %arg3[%c0_16, %c8] : memref<16x9xf32, #tpu.memory_space<vmem>>, vector<16x1xf32>
    %c0_17 = arith.constant 0 : index
    %c0_18 = arith.constant 0 : index
    %20 = vector.load %arg9[%c0_17, %c0_18] : memref<4x288xf32, #tpu.memory_space<vmem>>, vector<4x288xf32>
    %21 = vector.extract_strided_slice %10 {offsets = [0, 0], sizes = [16, 1], strides = [1, 1]} : vector<16x4xf32> to vector<16x1xf32>
    %22 = vector.extract_strided_slice %20 {offsets = [0, 0], sizes = [1, 288], strides = [1, 1]} : vector<4x288xf32> to vector<1x288xf32>
    %23 = vector.broadcast %21 : vector<16x1xf32> to vector<16x288xf32>
    %24 = vector.broadcast %22 : vector<1x288xf32> to vector<16x288xf32>
    %25 = arith.mulf %23, %24 : vector<16x288xf32>
    %26 = vector.extract_strided_slice %10 {offsets = [0, 1], sizes = [16, 1], strides = [1, 1]} : vector<16x4xf32> to vector<16x1xf32>
    %27 = vector.extract_strided_slice %20 {offsets = [1, 0], sizes = [1, 288], strides = [1, 1]} : vector<4x288xf32> to vector<1x288xf32>
    %28 = vector.broadcast %26 : vector<16x1xf32> to vector<16x288xf32>
    %29 = vector.broadcast %27 : vector<1x288xf32> to vector<16x288xf32>
    %30 = arith.mulf %28, %29 : vector<16x288xf32>
    %31 = arith.addf %25, %30 : vector<16x288xf32>
    %32 = vector.extract_strided_slice %10 {offsets = [0, 2], sizes = [16, 1], strides = [1, 1]} : vector<16x4xf32> to vector<16x1xf32>
    %33 = vector.extract_strided_slice %20 {offsets = [2, 0], sizes = [1, 288], strides = [1, 1]} : vector<4x288xf32> to vector<1x288xf32>
    %34 = vector.broadcast %32 : vector<16x1xf32> to vector<16x288xf32>
    %35 = vector.broadcast %33 : vector<1x288xf32> to vector<16x288xf32>
    %36 = arith.mulf %34, %35 : vector<16x288xf32>
    %37 = arith.addf %31, %36 : vector<16x288xf32>
    %38 = vector.extract_strided_slice %10 {offsets = [0, 3], sizes = [16, 1], strides = [1, 1]} : vector<16x4xf32> to vector<16x1xf32>
    %39 = vector.extract_strided_slice %20 {offsets = [3, 0], sizes = [1, 288], strides = [1, 1]} : vector<4x288xf32> to vector<1x288xf32>
    %40 = vector.broadcast %38 : vector<16x1xf32> to vector<16x288xf32>
    %41 = vector.broadcast %39 : vector<1x288xf32> to vector<16x288xf32>
    %42 = arith.mulf %40, %41 : vector<16x288xf32>
    %43 = arith.addf %37, %42 : vector<16x288xf32>
    %44 = vector.extract_strided_slice %43 {offsets = [0, 0], sizes = [16, 32], strides = [1, 1]} : vector<16x288xf32> to vector<16x32xf32>
    %c5_i32 = arith.constant 5 : i32
    %45 = tpu.dynamic_rotate %44 by %c5_i32 dim 0 : vector<16x32xf32>, i32 -> vector<16x32xf32>
    %46 = vector.broadcast %11 : vector<16x1xf32> to vector<16x32xf32>
    %47 = arith.mulf %46, %45 : vector<16x32xf32>
    %48 = vector.extract_strided_slice %43 {offsets = [0, 32], sizes = [16, 32], strides = [1, 1]} : vector<16x288xf32> to vector<16x32xf32>
    %c4_i32 = arith.constant 4 : i32
    %49 = tpu.dynamic_rotate %48 by %c4_i32 dim 0 : vector<16x32xf32>, i32 -> vector<16x32xf32>
    %50 = vector.broadcast %12 : vector<16x1xf32> to vector<16x32xf32>
    %51 = arith.mulf %50, %49 : vector<16x32xf32>
    %52 = arith.addf %47, %51 : vector<16x32xf32>
    %53 = vector.extract_strided_slice %43 {offsets = [0, 64], sizes = [16, 32], strides = [1, 1]} : vector<16x288xf32> to vector<16x32xf32>
    %c3_i32 = arith.constant 3 : i32
    %54 = tpu.dynamic_rotate %53 by %c3_i32 dim 0 : vector<16x32xf32>, i32 -> vector<16x32xf32>
    %55 = vector.broadcast %13 : vector<16x1xf32> to vector<16x32xf32>
    %56 = arith.mulf %55, %54 : vector<16x32xf32>
    %57 = arith.addf %52, %56 : vector<16x32xf32>
    %58 = vector.extract_strided_slice %43 {offsets = [0, 96], sizes = [16, 32], strides = [1, 1]} : vector<16x288xf32> to vector<16x32xf32>
    %c1_i32 = arith.constant 1 : i32
    %59 = tpu.dynamic_rotate %58 by %c1_i32 dim 0 : vector<16x32xf32>, i32 -> vector<16x32xf32>
    %60 = vector.broadcast %14 : vector<16x1xf32> to vector<16x32xf32>
    %61 = arith.mulf %60, %59 : vector<16x32xf32>
    %62 = arith.addf %57, %61 : vector<16x32xf32>
    %63 = vector.extract_strided_slice %43 {offsets = [0, 128], sizes = [16, 32], strides = [1, 1]} : vector<16x288xf32> to vector<16x32xf32>
    %64 = vector.broadcast %15 : vector<16x1xf32> to vector<16x32xf32>
    %65 = arith.mulf %64, %63 : vector<16x32xf32>
    %66 = arith.addf %62, %65 : vector<16x32xf32>
    %67 = vector.extract_strided_slice %43 {offsets = [0, 160], sizes = [16, 32], strides = [1, 1]} : vector<16x288xf32> to vector<16x32xf32>
    %c15_i32 = arith.constant 15 : i32
    %68 = tpu.dynamic_rotate %67 by %c15_i32 dim 0 : vector<16x32xf32>, i32 -> vector<16x32xf32>
    %69 = vector.broadcast %16 : vector<16x1xf32> to vector<16x32xf32>
    %70 = arith.mulf %69, %68 : vector<16x32xf32>
    %71 = arith.addf %66, %70 : vector<16x32xf32>
    %72 = vector.extract_strided_slice %43 {offsets = [0, 192], sizes = [16, 32], strides = [1, 1]} : vector<16x288xf32> to vector<16x32xf32>
    %c13_i32 = arith.constant 13 : i32
    %73 = tpu.dynamic_rotate %72 by %c13_i32 dim 0 : vector<16x32xf32>, i32 -> vector<16x32xf32>
    %74 = vector.broadcast %17 : vector<16x1xf32> to vector<16x32xf32>
    %75 = arith.mulf %74, %73 : vector<16x32xf32>
    %76 = arith.addf %71, %75 : vector<16x32xf32>
    %77 = vector.extract_strided_slice %43 {offsets = [0, 224], sizes = [16, 32], strides = [1, 1]} : vector<16x288xf32> to vector<16x32xf32>
    %c12_i32 = arith.constant 12 : i32
    %78 = tpu.dynamic_rotate %77 by %c12_i32 dim 0 : vector<16x32xf32>, i32 -> vector<16x32xf32>
    %79 = vector.broadcast %18 : vector<16x1xf32> to vector<16x32xf32>
    %80 = arith.mulf %79, %78 : vector<16x32xf32>
    %81 = arith.addf %76, %80 : vector<16x32xf32>
    %82 = vector.extract_strided_slice %43 {offsets = [0, 256], sizes = [16, 32], strides = [1, 1]} : vector<16x288xf32> to vector<16x32xf32>
    %c11_i32 = arith.constant 11 : i32
    %83 = tpu.dynamic_rotate %82 by %c11_i32 dim 0 : vector<16x32xf32>, i32 -> vector<16x32xf32>
    %84 = vector.broadcast %19 : vector<16x1xf32> to vector<16x32xf32>
    %85 = arith.mulf %84, %83 : vector<16x32xf32>
    %86 = arith.addf %81, %85 : vector<16x32xf32>
    %c0_19 = arith.constant 0 : index
    %c0_20 = arith.constant 0 : index
    %87 = vector.load %arg6[%c0_19, %c0_20] : memref<8x32xf32, #tpu.memory_space<vmem>>, vector<8x32xf32>
    %c0_21 = arith.constant 0 : index
    %c0_22 = arith.constant 0 : index
    %88 = vector.load %arg12[%c0_21, %c0_22] : memref<32x64xf32, #tpu.memory_space<vmem>>, vector<32x64xf32>
    %89 = arith.truncf %87 : vector<8x32xf32> to vector<8x32xbf16>
    %90 = arith.truncf %88 : vector<32x64xf32> to vector<32x64xbf16>
    %cst_23 = arith.constant dense<0.000000e+00> : vector<8x64xf32>
    %91 = tpu.matmul %89, %90, %cst_23 {dimension_numbers = #tpu.dot_dimension_numbers<[1], [0], [0], [1], [0, 0, 1, 1], [], []>} : vector<8x32xbf16>, vector<32x64xbf16>, vector<8x64xf32> -> vector<8x64xf32>
    %92 = vector.extract_strided_slice %91 {offsets = [0, 0], sizes = [8, 32], strides = [1, 1]} : vector<8x64xf32> to vector<8x32xf32>
    %93 = vector.extract_strided_slice %91 {offsets = [0, 32], sizes = [8, 32], strides = [1, 1]} : vector<8x64xf32> to vector<8x32xf32>
    %c0_24 = arith.constant 0 : index
    %c0_25 = arith.constant 0 : index
    %94 = vector.load %arg11[%c0_24, %c0_25] : memref<32x32xf32, #tpu.memory_space<vmem>>, vector<32x32xf32>
    %95 = arith.truncf %94 : vector<32x32xf32> to vector<32x32xbf16>
    %96 = arith.truncf %92 : vector<8x32xf32> to vector<8x32xbf16>
    %cst_26 = arith.constant dense<0.000000e+00> : vector<32x8xf32>
    %97 = tpu.matmul %95, %96, %cst_26 {dimension_numbers = #tpu.dot_dimension_numbers<[1], [1], [0], [0], [0, 0, 1, 0], [], []>} : vector<32x32xbf16>, vector<8x32xbf16>, vector<32x8xf32> -> vector<32x8xf32>
    %cst_27 = arith.constant 0.176776692 : f32
    %98 = vector.broadcast %cst_27 : f32 to vector<32x8xf32>
    %99 = arith.mulf %97, %98 : vector<32x8xf32>
    %100 = arith.truncf %99 : vector<32x8xf32> to vector<32x8xbf16>
    %c0_28 = arith.constant 0 : index
    %c0_29 = arith.constant 0 : index
    %101 = vector.load %arg13[%c0_28, %c0_29] : memref<32x32xf32, #tpu.memory_space<vmem>>, vector<32x32xf32>
    %102 = arith.truncf %93 : vector<8x32xf32> to vector<8x32xbf16>
    %103 = arith.truncf %101 : vector<32x32xf32> to vector<32x32xbf16>
    %cst_30 = arith.constant dense<0.000000e+00> : vector<8x32xf32>
    %104 = tpu.matmul %102, %103, %cst_30 {dimension_numbers = #tpu.dot_dimension_numbers<[1], [0], [0], [1], [0, 0, 1, 1], [], []>} : vector<8x32xbf16>, vector<32x32xbf16>, vector<8x32xf32> -> vector<8x32xf32>
    %c0_31 = arith.constant 0 : index
    %c0_32 = arith.constant 0 : index
    %105 = vector.load %arg10[%c0_31, %c0_32] : memref<4x288xf32, #tpu.memory_space<vmem>>, vector<4x288xf32>
    %c0_33 = arith.constant 0 : index
    %c0_34 = arith.constant 0 : index
    %106 = vector.load %arg14[%c0_33, %c0_34] : memref<32x36xf32, #tpu.memory_space<vmem>>, vector<32x36xf32>
    %107 = arith.truncf %106 : vector<32x36xf32> to vector<32x36xbf16>
    %c0_35 = arith.constant 0 : index
    %c0_36 = arith.constant 0 : index
    %108 = vector.load %arg15[%c0_35, %c0_36] : memref<1x4xf32, #tpu.memory_space<vmem>>, vector<1x4xf32>
    %c0_37 = arith.constant 0 : index
    %c0_38 = arith.constant 0 : index
    %c0_39 = arith.constant 0 : index
    %109 = vector.load %arg2[%c0_37, %c0_38, %c0_39] : memref<1x16x4xf32, #tpu.memory_space<vmem>>, vector<1x16x4xf32>
    %110 = vector.shape_cast %109 : vector<1x16x4xf32> to vector<16x4xf32>
    %c0_i32 = arith.constant 0 : i32
    %c4_i32_40 = arith.constant 4 : i32
    %111 = arith.addi %c0_i32, %c4_i32_40 : i32
    %c1_i32_41 = arith.constant 1 : i32
    %112 = scf.for %arg19 = %c0_i32 to %111 step %c1_i32_41 iter_args(%arg20 = %110) -> (vector<16x4xf32>)  : i32 {
      %145 = arith.index_cast %arg19 : i32 to index
      %c0_51 = arith.constant 0 : index
      %146 = vector.load %arg5[%145, %c0_51] : memref<4x32xf32, #tpu.memory_space<vmem>>, vector<1x32xf32>
      %147 = vector.extract_strided_slice %arg20 {offsets = [0, 0], sizes = [16, 1], strides = [1, 1]} : vector<16x4xf32> to vector<16x1xf32>
      %148 = vector.extract_strided_slice %105 {offsets = [0, 0], sizes = [1, 288], strides = [1, 1]} : vector<4x288xf32> to vector<1x288xf32>
      %149 = vector.broadcast %147 : vector<16x1xf32> to vector<16x288xf32>
      %150 = vector.broadcast %148 : vector<1x288xf32> to vector<16x288xf32>
      %151 = arith.mulf %149, %150 : vector<16x288xf32>
      %152 = vector.extract_strided_slice %arg20 {offsets = [0, 1], sizes = [16, 1], strides = [1, 1]} : vector<16x4xf32> to vector<16x1xf32>
      %153 = vector.extract_strided_slice %105 {offsets = [1, 0], sizes = [1, 288], strides = [1, 1]} : vector<4x288xf32> to vector<1x288xf32>
      %154 = vector.broadcast %152 : vector<16x1xf32> to vector<16x288xf32>
      %155 = vector.broadcast %153 : vector<1x288xf32> to vector<16x288xf32>
      %156 = arith.mulf %154, %155 : vector<16x288xf32>
      %157 = arith.addf %151, %156 : vector<16x288xf32>
      %158 = vector.extract_strided_slice %arg20 {offsets = [0, 2], sizes = [16, 1], strides = [1, 1]} : vector<16x4xf32> to vector<16x1xf32>
      %159 = vector.extract_strided_slice %105 {offsets = [2, 0], sizes = [1, 288], strides = [1, 1]} : vector<4x288xf32> to vector<1x288xf32>
      %160 = vector.broadcast %158 : vector<16x1xf32> to vector<16x288xf32>
      %161 = vector.broadcast %159 : vector<1x288xf32> to vector<16x288xf32>
      %162 = arith.mulf %160, %161 : vector<16x288xf32>
      %163 = arith.addf %157, %162 : vector<16x288xf32>
      %164 = vector.extract_strided_slice %arg20 {offsets = [0, 3], sizes = [16, 1], strides = [1, 1]} : vector<16x4xf32> to vector<16x1xf32>
      %165 = vector.extract_strided_slice %105 {offsets = [3, 0], sizes = [1, 288], strides = [1, 1]} : vector<4x288xf32> to vector<1x288xf32>
      %166 = vector.broadcast %164 : vector<16x1xf32> to vector<16x288xf32>
      %167 = vector.broadcast %165 : vector<1x288xf32> to vector<16x288xf32>
      %168 = arith.mulf %166, %167 : vector<16x288xf32>
      %169 = arith.addf %163, %168 : vector<16x288xf32>
      %170 = vector.extract_strided_slice %169 {offsets = [0, 0], sizes = [16, 32], strides = [1, 1]} : vector<16x288xf32> to vector<16x32xf32>
      %c5_i32_52 = arith.constant 5 : i32
      %171 = tpu.dynamic_rotate %170 by %c5_i32_52 dim 0 : vector<16x32xf32>, i32 -> vector<16x32xf32>
      %172 = vector.broadcast %11 : vector<16x1xf32> to vector<16x32xf32>
      %173 = arith.mulf %172, %171 : vector<16x32xf32>
      %174 = vector.extract_strided_slice %169 {offsets = [0, 32], sizes = [16, 32], strides = [1, 1]} : vector<16x288xf32> to vector<16x32xf32>
      %c4_i32_53 = arith.constant 4 : i32
      %175 = tpu.dynamic_rotate %174 by %c4_i32_53 dim 0 : vector<16x32xf32>, i32 -> vector<16x32xf32>
      %176 = vector.broadcast %12 : vector<16x1xf32> to vector<16x32xf32>
      %177 = arith.mulf %176, %175 : vector<16x32xf32>
      %178 = arith.addf %173, %177 : vector<16x32xf32>
      %179 = vector.extract_strided_slice %169 {offsets = [0, 64], sizes = [16, 32], strides = [1, 1]} : vector<16x288xf32> to vector<16x32xf32>
      %c3_i32_54 = arith.constant 3 : i32
      %180 = tpu.dynamic_rotate %179 by %c3_i32_54 dim 0 : vector<16x32xf32>, i32 -> vector<16x32xf32>
      %181 = vector.broadcast %13 : vector<16x1xf32> to vector<16x32xf32>
      %182 = arith.mulf %181, %180 : vector<16x32xf32>
      %183 = arith.addf %178, %182 : vector<16x32xf32>
      %184 = vector.extract_strided_slice %169 {offsets = [0, 96], sizes = [16, 32], strides = [1, 1]} : vector<16x288xf32> to vector<16x32xf32>
      %c1_i32_55 = arith.constant 1 : i32
      %185 = tpu.dynamic_rotate %184 by %c1_i32_55 dim 0 : vector<16x32xf32>, i32 -> vector<16x32xf32>
      %186 = vector.broadcast %14 : vector<16x1xf32> to vector<16x32xf32>
      %187 = arith.mulf %186, %185 : vector<16x32xf32>
      %188 = arith.addf %183, %187 : vector<16x32xf32>
      %189 = vector.extract_strided_slice %169 {offsets = [0, 128], sizes = [16, 32], strides = [1, 1]} : vector<16x288xf32> to vector<16x32xf32>
      %190 = vector.broadcast %15 : vector<16x1xf32> to vector<16x32xf32>
      %191 = arith.mulf %190, %189 : vector<16x32xf32>
      %192 = arith.addf %188, %191 : vector<16x32xf32>
      %193 = vector.extract_strided_slice %169 {offsets = [0, 160], sizes = [16, 32], strides = [1, 1]} : vector<16x288xf32> to vector<16x32xf32>
      %c15_i32_56 = arith.constant 15 : i32
      %194 = tpu.dynamic_rotate %193 by %c15_i32_56 dim 0 : vector<16x32xf32>, i32 -> vector<16x32xf32>
      %195 = vector.broadcast %16 : vector<16x1xf32> to vector<16x32xf32>
      %196 = arith.mulf %195, %194 : vector<16x32xf32>
      %197 = arith.addf %192, %196 : vector<16x32xf32>
      %198 = vector.extract_strided_slice %169 {offsets = [0, 192], sizes = [16, 32], strides = [1, 1]} : vector<16x288xf32> to vector<16x32xf32>
      %c13_i32_57 = arith.constant 13 : i32
      %199 = tpu.dynamic_rotate %198 by %c13_i32_57 dim 0 : vector<16x32xf32>, i32 -> vector<16x32xf32>
      %200 = vector.broadcast %17 : vector<16x1xf32> to vector<16x32xf32>
      %201 = arith.mulf %200, %199 : vector<16x32xf32>
      %202 = arith.addf %197, %201 : vector<16x32xf32>
      %203 = vector.extract_strided_slice %169 {offsets = [0, 224], sizes = [16, 32], strides = [1, 1]} : vector<16x288xf32> to vector<16x32xf32>
      %c12_i32_58 = arith.constant 12 : i32
      %204 = tpu.dynamic_rotate %203 by %c12_i32_58 dim 0 : vector<16x32xf32>, i32 -> vector<16x32xf32>
      %205 = vector.broadcast %18 : vector<16x1xf32> to vector<16x32xf32>
      %206 = arith.mulf %205, %204 : vector<16x32xf32>
      %207 = arith.addf %202, %206 : vector<16x32xf32>
      %208 = vector.extract_strided_slice %169 {offsets = [0, 256], sizes = [16, 32], strides = [1, 1]} : vector<16x288xf32> to vector<16x32xf32>
      %c11_i32_59 = arith.constant 11 : i32
      %209 = tpu.dynamic_rotate %208 by %c11_i32_59 dim 0 : vector<16x32xf32>, i32 -> vector<16x32xf32>
      %210 = vector.broadcast %19 : vector<16x1xf32> to vector<16x32xf32>
      %211 = arith.mulf %210, %209 : vector<16x32xf32>
      %212 = arith.addf %207, %211 : vector<16x32xf32>
      %213 = arith.addf %86, %212 : vector<16x32xf32>
      %214 = vector.broadcast %146 : vector<1x32xf32> to vector<16x32xf32>
      %215 = arith.addf %213, %214 : vector<16x32xf32>
      %216 = arith.negf %215 : vector<16x32xf32>
      %217 = math.exp %216 : vector<16x32xf32>
      %cst_60 = arith.constant 1.000000e+00 : f32
      %218 = vector.broadcast %cst_60 : f32 to vector<16x32xf32>
      %219 = arith.addf %218, %217 : vector<16x32xf32>
      %220 = arith.divf %218, %219 : vector<16x32xf32>
      %221 = arith.mulf %215, %220 : vector<16x32xf32>
      %222 = arith.truncf %221 : vector<16x32xf32> to vector<16x32xbf16>
      %cst_61 = arith.constant dense<0.000000e+00> : vector<16x8xf32>
      %223 = tpu.matmul %222, %100, %cst_61 {dimension_numbers = #tpu.dot_dimension_numbers<[1], [0], [0], [1], [0, 0, 1, 1], [], []>} : vector<16x32xbf16>, vector<32x8xbf16>, vector<16x8xf32> -> vector<16x8xf32>
      %cst_62 = arith.constant dense<0xFF800000> : vector<16xf32>
      %224 = vector.multi_reduction <maximumf>, %223, %cst_62 [1] : vector<16x8xf32> to vector<16xf32>
      %225 = vector.shape_cast %224 : vector<16xf32> to vector<16x1xf32>
      %226 = vector.broadcast %225 : vector<16x1xf32> to vector<16x8xf32>
      %227 = arith.subf %223, %226 : vector<16x8xf32>
      %228 = math.exp %227 : vector<16x8xf32>
      %cst_63 = arith.constant dense<0.000000e+00> : vector<16xf32>
      %229 = vector.multi_reduction <add>, %228, %cst_63 [1] : vector<16x8xf32> to vector<16xf32>
      %230 = vector.shape_cast %229 : vector<16xf32> to vector<16x1xf32>
      %231 = tpu.reciprocal %230 : vector<16x1xf32> -> vector<16x1xf32>
      %232 = vector.broadcast %231 : vector<16x1xf32> to vector<16x8xf32>
      %233 = arith.mulf %228, %232 : vector<16x8xf32>
      %234 = vector.extract_strided_slice %233 {offsets = [0, 0], sizes = [16, 1], strides = [1, 1]} : vector<16x8xf32> to vector<16x1xf32>
      %235 = vector.extract_strided_slice %104 {offsets = [0, 0], sizes = [1, 32], strides = [1, 1]} : vector<8x32xf32> to vector<1x32xf32>
      %236 = vector.broadcast %234 : vector<16x1xf32> to vector<16x32xf32>
      %237 = vector.broadcast %235 : vector<1x32xf32> to vector<16x32xf32>
      %238 = arith.mulf %236, %237 : vector<16x32xf32>
      %239 = vector.extract_strided_slice %233 {offsets = [0, 1], sizes = [16, 1], strides = [1, 1]} : vector<16x8xf32> to vector<16x1xf32>
      %240 = vector.extract_strided_slice %104 {offsets = [1, 0], sizes = [1, 32], strides = [1, 1]} : vector<8x32xf32> to vector<1x32xf32>
      %241 = vector.broadcast %239 : vector<16x1xf32> to vector<16x32xf32>
      %242 = vector.broadcast %240 : vector<1x32xf32> to vector<16x32xf32>
      %243 = arith.mulf %241, %242 : vector<16x32xf32>
      %244 = arith.addf %238, %243 : vector<16x32xf32>
      %245 = vector.extract_strided_slice %233 {offsets = [0, 2], sizes = [16, 1], strides = [1, 1]} : vector<16x8xf32> to vector<16x1xf32>
      %246 = vector.extract_strided_slice %104 {offsets = [2, 0], sizes = [1, 32], strides = [1, 1]} : vector<8x32xf32> to vector<1x32xf32>
      %247 = vector.broadcast %245 : vector<16x1xf32> to vector<16x32xf32>
      %248 = vector.broadcast %246 : vector<1x32xf32> to vector<16x32xf32>
      %249 = arith.mulf %247, %248 : vector<16x32xf32>
      %250 = arith.addf %244, %249 : vector<16x32xf32>
      %251 = vector.extract_strided_slice %233 {offsets = [0, 3], sizes = [16, 1], strides = [1, 1]} : vector<16x8xf32> to vector<16x1xf32>
      %252 = vector.extract_strided_slice %104 {offsets = [3, 0], sizes = [1, 32], strides = [1, 1]} : vector<8x32xf32> to vector<1x32xf32>
      %253 = vector.broadcast %251 : vector<16x1xf32> to vector<16x32xf32>
      %254 = vector.broadcast %252 : vector<1x32xf32> to vector<16x32xf32>
      %255 = arith.mulf %253, %254 : vector<16x32xf32>
      %256 = arith.addf %250, %255 : vector<16x32xf32>
      %257 = vector.extract_strided_slice %233 {offsets = [0, 4], sizes = [16, 1], strides = [1, 1]} : vector<16x8xf32> to vector<16x1xf32>
      %258 = vector.extract_strided_slice %104 {offsets = [4, 0], sizes = [1, 32], strides = [1, 1]} : vector<8x32xf32> to vector<1x32xf32>
      %259 = vector.broadcast %257 : vector<16x1xf32> to vector<16x32xf32>
      %260 = vector.broadcast %258 : vector<1x32xf32> to vector<16x32xf32>
      %261 = arith.mulf %259, %260 : vector<16x32xf32>
      %262 = arith.addf %256, %261 : vector<16x32xf32>
      %263 = vector.extract_strided_slice %233 {offsets = [0, 5], sizes = [16, 1], strides = [1, 1]} : vector<16x8xf32> to vector<16x1xf32>
      %264 = vector.extract_strided_slice %104 {offsets = [5, 0], sizes = [1, 32], strides = [1, 1]} : vector<8x32xf32> to vector<1x32xf32>
      %265 = vector.broadcast %263 : vector<16x1xf32> to vector<16x32xf32>
      %266 = vector.broadcast %264 : vector<1x32xf32> to vector<16x32xf32>
      %267 = arith.mulf %265, %266 : vector<16x32xf32>
      %268 = arith.addf %262, %267 : vector<16x32xf32>
      %269 = vector.extract_strided_slice %233 {offsets = [0, 6], sizes = [16, 1], strides = [1, 1]} : vector<16x8xf32> to vector<16x1xf32>
      %270 = vector.extract_strided_slice %104 {offsets = [6, 0], sizes = [1, 32], strides = [1, 1]} : vector<8x32xf32> to vector<1x32xf32>
      %271 = vector.broadcast %269 : vector<16x1xf32> to vector<16x32xf32>
      %272 = vector.broadcast %270 : vector<1x32xf32> to vector<16x32xf32>
      %273 = arith.mulf %271, %272 : vector<16x32xf32>
      %274 = arith.addf %268, %273 : vector<16x32xf32>
      %275 = vector.extract_strided_slice %233 {offsets = [0, 7], sizes = [16, 1], strides = [1, 1]} : vector<16x8xf32> to vector<16x1xf32>
      %276 = vector.extract_strided_slice %104 {offsets = [7, 0], sizes = [1, 32], strides = [1, 1]} : vector<8x32xf32> to vector<1x32xf32>
      %277 = vector.broadcast %275 : vector<16x1xf32> to vector<16x32xf32>
      %278 = vector.broadcast %276 : vector<1x32xf32> to vector<16x32xf32>
      %279 = arith.mulf %277, %278 : vector<16x32xf32>
      %280 = arith.addf %274, %279 : vector<16x32xf32>
      %281 = arith.addf %221, %280 : vector<16x32xf32>
      %282 = arith.truncf %281 : vector<16x32xf32> to vector<16x32xbf16>
      %cst_64 = arith.constant dense<0.000000e+00> : vector<16x36xf32>
      %283 = tpu.matmul %282, %107, %cst_64 {dimension_numbers = #tpu.dot_dimension_numbers<[1], [0], [0], [1], [0, 0, 1, 1], [], []>} : vector<16x32xbf16>, vector<32x36xbf16>, vector<16x36xf32> -> vector<16x36xf32>
      %284 = vector.extract_strided_slice %283 {offsets = [0, 0], sizes = [16, 4], strides = [1, 1]} : vector<16x36xf32> to vector<16x4xf32>
      %c5_i32_65 = arith.constant 5 : i32
      %285 = tpu.dynamic_rotate %284 by %c5_i32_65 dim 0 : vector<16x4xf32>, i32 -> vector<16x4xf32>
      %286 = vector.broadcast %11 : vector<16x1xf32> to vector<16x4xf32>
      %287 = arith.mulf %286, %285 : vector<16x4xf32>
      %288 = vector.extract_strided_slice %283 {offsets = [0, 4], sizes = [16, 4], strides = [1, 1]} : vector<16x36xf32> to vector<16x4xf32>
      %c4_i32_66 = arith.constant 4 : i32
      %289 = tpu.dynamic_rotate %288 by %c4_i32_66 dim 0 : vector<16x4xf32>, i32 -> vector<16x4xf32>
      %290 = vector.broadcast %12 : vector<16x1xf32> to vector<16x4xf32>
      %291 = arith.mulf %290, %289 : vector<16x4xf32>
      %292 = arith.addf %287, %291 : vector<16x4xf32>
      %293 = vector.extract_strided_slice %283 {offsets = [0, 8], sizes = [16, 4], strides = [1, 1]} : vector<16x36xf32> to vector<16x4xf32>
      %c3_i32_67 = arith.constant 3 : i32
      %294 = tpu.dynamic_rotate %293 by %c3_i32_67 dim 0 : vector<16x4xf32>, i32 -> vector<16x4xf32>
      %295 = vector.broadcast %13 : vector<16x1xf32> to vector<16x4xf32>
      %296 = arith.mulf %295, %294 : vector<16x4xf32>
      %297 = arith.addf %292, %296 : vector<16x4xf32>
      %298 = vector.extract_strided_slice %283 {offsets = [0, 12], sizes = [16, 4], strides = [1, 1]} : vector<16x36xf32> to vector<16x4xf32>
      %c1_i32_68 = arith.constant 1 : i32
      %299 = tpu.dynamic_rotate %298 by %c1_i32_68 dim 0 : vector<16x4xf32>, i32 -> vector<16x4xf32>
      %300 = vector.broadcast %14 : vector<16x1xf32> to vector<16x4xf32>
      %301 = arith.mulf %300, %299 : vector<16x4xf32>
      %302 = arith.addf %297, %301 : vector<16x4xf32>
      %303 = vector.extract_strided_slice %283 {offsets = [0, 16], sizes = [16, 4], strides = [1, 1]} : vector<16x36xf32> to vector<16x4xf32>
      %304 = vector.broadcast %15 : vector<16x1xf32> to vector<16x4xf32>
      %305 = arith.mulf %304, %303 : vector<16x4xf32>
      %306 = arith.addf %302, %305 : vector<16x4xf32>
      %307 = vector.extract_strided_slice %283 {offsets = [0, 20], sizes = [16, 4], strides = [1, 1]} : vector<16x36xf32> to vector<16x4xf32>
      %c15_i32_69 = arith.constant 15 : i32
      %308 = tpu.dynamic_rotate %307 by %c15_i32_69 dim 0 : vector<16x4xf32>, i32 -> vector<16x4xf32>
      %309 = vector.broadcast %16 : vector<16x1xf32> to vector<16x4xf32>
      %310 = arith.mulf %309, %308 : vector<16x4xf32>
      %311 = arith.addf %306, %310 : vector<16x4xf32>
      %312 = vector.extract_strided_slice %283 {offsets = [0, 24], sizes = [16, 4], strides = [1, 1]} : vector<16x36xf32> to vector<16x4xf32>
      %c13_i32_70 = arith.constant 13 : i32
      %313 = tpu.dynamic_rotate %312 by %c13_i32_70 dim 0 : vector<16x4xf32>, i32 -> vector<16x4xf32>
      %314 = vector.broadcast %17 : vector<16x1xf32> to vector<16x4xf32>
      %315 = arith.mulf %314, %313 : vector<16x4xf32>
      %316 = arith.addf %311, %315 : vector<16x4xf32>
      %317 = vector.extract_strided_slice %283 {offsets = [0, 28], sizes = [16, 4], strides = [1, 1]} : vector<16x36xf32> to vector<16x4xf32>
      %c12_i32_71 = arith.constant 12 : i32
      %318 = tpu.dynamic_rotate %317 by %c12_i32_71 dim 0 : vector<16x4xf32>, i32 -> vector<16x4xf32>
      %319 = vector.broadcast %18 : vector<16x1xf32> to vector<16x4xf32>
      %320 = arith.mulf %319, %318 : vector<16x4xf32>
      %321 = arith.addf %316, %320 : vector<16x4xf32>
      %322 = vector.extract_strided_slice %283 {offsets = [0, 32], sizes = [16, 4], strides = [1, 1]} : vector<16x36xf32> to vector<16x4xf32>
      %c11_i32_72 = arith.constant 11 : i32
      %323 = tpu.dynamic_rotate %322 by %c11_i32_72 dim 0 : vector<16x4xf32>, i32 -> vector<16x4xf32>
      %324 = vector.broadcast %19 : vector<16x1xf32> to vector<16x4xf32>
      %325 = arith.mulf %324, %323 : vector<16x4xf32>
      %326 = arith.addf %321, %325 : vector<16x4xf32>
      %327 = vector.broadcast %108 : vector<1x4xf32> to vector<16x4xf32>
      %328 = arith.addf %326, %327 : vector<16x4xf32>
      %329 = arith.index_cast %arg19 : i32 to index
      %c0_73 = arith.constant 0 : index
      %330 = vector.load %arg4[%329, %c0_73] : memref<4x2xf32, #tpu.memory_space<vmem>>, vector<1x2xf32>
      %331 = vector.extract_strided_slice %330 {offsets = [0, 0], sizes = [1, 1], strides = [1, 1]} : vector<1x2xf32> to vector<1x1xf32>
      %332 = vector.broadcast %331 : vector<1x1xf32> to vector<16x4xf32>
      %333 = arith.mulf %332, %arg20 : vector<16x4xf32>
      %334 = vector.extract_strided_slice %330 {offsets = [0, 1], sizes = [1, 1], strides = [1, 1]} : vector<1x2xf32> to vector<1x1xf32>
      %335 = vector.broadcast %334 : vector<1x1xf32> to vector<16x4xf32>
      %336 = arith.mulf %335, %328 : vector<16x4xf32>
      %337 = arith.addf %333, %336 : vector<16x4xf32>
      scf.yield %337 : vector<16x4xf32>
    }
    %c4_i32_42 = arith.constant 4 : i32
    %cst_43 = arith.constant 5.4899807 : f32
    %113 = vector.broadcast %cst_43 : f32 to vector<16x4xf32>
    %114 = arith.mulf %112, %113 : vector<16x4xf32>
    %c0_44 = arith.constant 0 : index
    %c0_45 = arith.constant 0 : index
    %115 = vector.load %arg17[%c0_44, %c0_45] : memref<1x128xf32, #tpu.memory_space<vmem>>, vector<1x128xf32>
    %c0_46 = arith.constant 0 : index
    %c0_47 = arith.constant 0 : index
    %116 = vector.load %arg16[%c0_46, %c0_47] : memref<4x128xf32, #tpu.memory_space<vmem>>, vector<4x128xf32>
    %117 = vector.extract_strided_slice %114 {offsets = [0, 0], sizes = [16, 1], strides = [1, 1]} : vector<16x4xf32> to vector<16x1xf32>
    %118 = vector.extract_strided_slice %116 {offsets = [0, 0], sizes = [1, 128], strides = [1, 1]} : vector<4x128xf32> to vector<1x128xf32>
    %119 = vector.broadcast %117 : vector<16x1xf32> to vector<16x128xf32>
    %120 = vector.broadcast %118 : vector<1x128xf32> to vector<16x128xf32>
    %121 = arith.mulf %119, %120 : vector<16x128xf32>
    %122 = vector.extract_strided_slice %114 {offsets = [0, 1], sizes = [16, 1], strides = [1, 1]} : vector<16x4xf32> to vector<16x1xf32>
    %123 = vector.extract_strided_slice %116 {offsets = [1, 0], sizes = [1, 128], strides = [1, 1]} : vector<4x128xf32> to vector<1x128xf32>
    %124 = vector.broadcast %122 : vector<16x1xf32> to vector<16x128xf32>
    %125 = vector.broadcast %123 : vector<1x128xf32> to vector<16x128xf32>
    %126 = arith.mulf %124, %125 : vector<16x128xf32>
    %127 = arith.addf %121, %126 : vector<16x128xf32>
    %128 = vector.extract_strided_slice %114 {offsets = [0, 2], sizes = [16, 1], strides = [1, 1]} : vector<16x4xf32> to vector<16x1xf32>
    %129 = vector.extract_strided_slice %116 {offsets = [2, 0], sizes = [1, 128], strides = [1, 1]} : vector<4x128xf32> to vector<1x128xf32>
    %130 = vector.broadcast %128 : vector<16x1xf32> to vector<16x128xf32>
    %131 = vector.broadcast %129 : vector<1x128xf32> to vector<16x128xf32>
    %132 = arith.mulf %130, %131 : vector<16x128xf32>
    %133 = arith.addf %127, %132 : vector<16x128xf32>
    %134 = vector.extract_strided_slice %114 {offsets = [0, 3], sizes = [16, 1], strides = [1, 1]} : vector<16x4xf32> to vector<16x1xf32>
    %135 = vector.extract_strided_slice %116 {offsets = [3, 0], sizes = [1, 128], strides = [1, 1]} : vector<4x128xf32> to vector<1x128xf32>
    %136 = vector.broadcast %134 : vector<16x1xf32> to vector<16x128xf32>
    %137 = vector.broadcast %135 : vector<1x128xf32> to vector<16x128xf32>
    %138 = arith.mulf %136, %137 : vector<16x128xf32>
    %139 = arith.addf %133, %138 : vector<16x128xf32>
    %140 = vector.broadcast %115 : vector<1x128xf32> to vector<16x128xf32>
    %141 = arith.addf %140, %139 : vector<16x128xf32>
    %c0_48 = arith.constant 0 : index
    %c0_49 = arith.constant 0 : index
    %c0_50 = arith.constant 0 : index
    %142 = vector.load %arg18[%c0_48, %c0_49, %c0_50] : memref<1x16x128xf32, #tpu.memory_space<vmem>>, vector<1x16x128xf32>
    %143 = vector.shape_cast %142 : vector<1x16x128xf32> to vector<16x128xf32>
    %144 = vector.shape_cast %141 : vector<16x128xf32> to vector<1x16x128xf32>
    tpu.vector_store %arg18[%c0_48, %c0_49, %c0_50], %144 {strides = array<i32>} : memref<1x16x128xf32, #tpu.memory_space<vmem>>, vector<1x16x128xf32>,
    return
  }
  func.func @transform_0(%arg0: i32) -> (i32, i32, i32) {
    %c0_i32 = arith.constant 0 : i32
    %c0_i32_0 = arith.constant 0 : i32
    %c0_i32_1 = arith.constant 0 : i32
    return %arg0, %c0_i32, %c0_i32_0 : i32, i32, i32
  }
  func.func @transform_1(%arg0: i32) -> (i32, i32, i32) {
    %c0_i32 = arith.constant 0 : i32
    %c0_i32_0 = arith.constant 0 : i32
    %c0_i32_1 = arith.constant 0 : i32
    return %arg0, %c0_i32, %c0_i32_0 : i32, i32, i32
  }
  func.func @transform_2(%arg0: i32) -> (i32, i32) {
    %c0_i32 = arith.constant 0 : i32
    %c0_i32_0 = arith.constant 0 : i32
    %c0_i32_1 = arith.constant 0 : i32
    return %c0_i32, %c0_i32_0 : i32, i32
  }
  func.func @transform_3(%arg0: i32) -> (i32, i32) {
    %c0_i32 = arith.constant 0 : i32
    %c0_i32_0 = arith.constant 0 : i32
    %c0_i32_1 = arith.constant 0 : i32
    return %c0_i32, %c0_i32_0 : i32, i32
  }
  func.func @transform_4(%arg0: i32) -> (i32, i32) {
    %c0_i32 = arith.constant 0 : i32
    %c0_i32_0 = arith.constant 0 : i32
    %c0_i32_1 = arith.constant 0 : i32
    return %c0_i32, %c0_i32_0 : i32, i32
  }
  func.func @transform_5(%arg0: i32) -> (i32, i32) {
    %c0_i32 = arith.constant 0 : i32
    %c0_i32_0 = arith.constant 0 : i32
    %c0_i32_1 = arith.constant 0 : i32
    return %c0_i32, %c0_i32_0 : i32, i32
  }
  func.func @transform_6(%arg0: i32) -> (i32, i32) {
    %c0_i32 = arith.constant 0 : i32
    %c0_i32_0 = arith.constant 0 : i32
    %c0_i32_1 = arith.constant 0 : i32
    return %c0_i32, %c0_i32_0 : i32, i32
  }
  func.func @transform_7(%arg0: i32) -> (i32, i32) {
    %c0_i32 = arith.constant 0 : i32
    %c0_i32_0 = arith.constant 0 : i32
    %c0_i32_1 = arith.constant 0 : i32
    return %c0_i32, %c0_i32_0 : i32, i32
  }
  func.func @transform_8(%arg0: i32) -> (i32, i32) {
    %c0_i32 = arith.constant 0 : i32
    %c0_i32_0 = arith.constant 0 : i32
    %c0_i32_1 = arith.constant 0 : i32
    return %c0_i32, %c0_i32_0 : i32, i32
  }
  func.func @transform_9(%arg0: i32) -> (i32, i32) {
    %c0_i32 = arith.constant 0 : i32
    %c0_i32_0 = arith.constant 0 : i32
    %c0_i32_1 = arith.constant 0 : i32
    return %c0_i32, %c0_i32_0 : i32, i32
  }
  func.func @transform_10(%arg0: i32) -> (i32, i32) {
    %c0_i32 = arith.constant 0 : i32
    %c0_i32_0 = arith.constant 0 : i32
    %c0_i32_1 = arith.constant 0 : i32
    return %c0_i32, %c0_i32_0 : i32, i32
  }
  func.func @transform_11(%arg0: i32) -> (i32, i32) {
    %c0_i32 = arith.constant 0 : i32
    %c0_i32_0 = arith.constant 0 : i32
    %c0_i32_1 = arith.constant 0 : i32
    return %c0_i32, %c0_i32_0 : i32, i32
  }
  func.func @transform_12(%arg0: i32) -> (i32, i32) {
    %c0_i32 = arith.constant 0 : i32
    %c0_i32_0 = arith.constant 0 : i32
    %c0_i32_1 = arith.constant 0 : i32
    return %c0_i32, %c0_i32_0 : i32, i32
  }
  func.func @transform_13(%arg0: i32) -> (i32, i32) {
    %c0_i32 = arith.constant 0 : i32
    %c0_i32_0 = arith.constant 0 : i32
    %c0_i32_1 = arith.constant 0 : i32
    return %c0_i32, %c0_i32_0 : i32, i32
  }
  func.func @transform_14(%arg0: i32) -> (i32, i32) {
    %c0_i32 = arith.constant 0 : i32
    %c0_i32_0 = arith.constant 0 : i32
    %c0_i32_1 = arith.constant 0 : i32
    return %c0_i32, %c0_i32_0 : i32, i32
  }
  func.func @transform_15(%arg0: i32) -> (i32, i32) {
    %c0_i32 = arith.constant 0 : i32
    %c0_i32_0 = arith.constant 0 : i32
    %c0_i32_1 = arith.constant 0 : i32
    return %c0_i32, %c0_i32_0 : i32, i32
  }
  func.func @transform_16(%arg0: i32) -> (i32, i32) {
    %c0_i32 = arith.constant 0 : i32
    %c0_i32_0 = arith.constant 0 : i32
    %c0_i32_1 = arith.constant 0 : i32
    return %c0_i32, %c0_i32_0 : i32, i32
  }
  func.func @transform_17(%arg0: i32) -> (i32, i32, i32) {
    %c0_i32 = arith.constant 0 : i32
    %c0_i32_0 = arith.constant 0 : i32
    %c0_i32_1 = arith.constant 0 : i32
    return %arg0, %c0_i32, %c0_i32_0 : i32, i32, i32
  }
}

</mosaic_0001>

<bundles_post_ra>
// kernel: marigold_forward.1
= control target key start
LH: loop header
LB: loop body
LE: loop exit
PB: predicated region body
PF: predicated region fallthrough
CT: control target
= control target key end

     0   :  { %s2475_s24 = smov 0   ;;  %s3210_s0 = inlined_call_operand.vmem [shape: f32[2,16,192], index: 0, kind: input, shape index: {}]   ;;  %s3211_s1 = inlined_call_operand.vmem [shape: f32[2,16,4], index: 1, kind: input, shape index: {}]   ;;  %s3212_s2 = inlined_call_operand.vmem [shape: f32[16,9], index: 2, kind: input, shape index: {}]   ;;  %s3213_s3 = inlined_call_operand.vmem [shape: f32[4,2], index: 3, kind: input, shape index: {}]   ;;  %s3214_s4 = inlined_call_operand.vmem [shape: f32[4,32], index: 4, kind: input, shape index: {}]   ;;  %s3215_s5 = inlined_call_operand.vmem [shape: f32[8,32], index: 5, kind: input, shape index: {}]   ;;  %s3216_s6 = inlined_call_operand.vmem [shape: f32[192,4], index: 6, kind: input, shape index: {}]   ;;  %s3217_s7 = inlined_call_operand.vmem [shape: f32[1,4], index: 7, kind: input, shape index: {}]   ;;  %s3218_s8 = inlined_call_operand.vmem [shape: f32[4,288], index: 8, kind: input, shape index: {}]   ;;  %s3219_s9 = inlined_call_operand.vmem [shape: f32[4,288], index: 9, kind: input, shape index: {}]   ;;  %s3220_s10 = inlined_call_operand.vmem [shape: f32[32,32], index: 10, kind: input, shape index: {}]   ;;  %s3221_s11 = inlined_call_operand.vmem [shape: f32[32,64], index: 11, kind: input, shape index: {}]   ;;  %s3222_s12 = inlined_call_operand.vmem [shape: f32[32,32], index: 12, kind: input, shape index: {}]   ;;  %s3223_s13 = inlined_call_operand.vmem [shape: f32[32,36], index: 13, kind: input, shape index: {}]   ;;  %s3224_s14 = inlined_call_operand.vmem [shape: f32[1,4], index: 14, kind: input, shape index: {}]   ;;  %s3225_s15 = inlined_call_operand.vmem [shape: f32[4,128], index: 15, kind: input, shape index: {}]   ;;  %s3226_s16 = inlined_call_operand.vmem [shape: f32[1,128], index: 16, kind: input, shape index: {}]   ;;  %s3227_s17 = inlined_call_operand.vmem [shape: f32[2,16,128], index: 17, kind: output, shape index: {}]  }
   0x1   :  { %3266 = sst [smem:[#allocation24_spill]] %s3210_s0 }
   0x2   :  { %3267 = sst [smem:[#allocation25_spill]] %s3211_s1 }
   0x3 LB: > { %s2097_s25 = sadd.s32 4294967295, %s2336_s24   ;;  %p2101_p0 = scmp.ge.s32.totalorder %s2336_s24, 1  ;;  %s2336_s24 = sphi %s2475_s24, %s27_s24  }
   0x4   : > { %p497_p1 = scmp.lt.s32.totalorder %s2336_s24, 3 }
   0x6   : > { %p498_p2 = pnand %p2101_p0, %p497_p1 }
   0x8   : > { %501 = sbr.rel (%p498_p2) target bundleno = 2160 (0x870), region = 88 }
   0xf   : > { %v574_v0 = vld [vmem:[%s3216_s6] sm:$0xff]  ;;  %v575_v1 = vld [vmem:[%s3216_s6 + $0x8] sm:$0xff]  ;;  %v576_v2 = vld [vmem:[%s3216_s6 + $0x10] sm:$0xff]  ;;  %v3232_v3 = vmov 0   ;;  %v2351_v6 = vmov 0.0   ;;  %p554_p3 = scmp.lt.s32.totalorder %s2097_s25, 1 }
  0x10   : > { %623 = vmatprep.subr.bf16.mxu0 %v3232_v3  ;;  %v600_v4 = vpack.c.bf16 %v575_v1, %v574_v0  ;;  %v577_v5 = vld [vmem:[%s3216_s6 + $0x18] sm:$0xff]  ;;  %2141 = vmatprep.subr.bf16.mxu1 %v2351_v6  ;;  %v1044_v7 = vld [vmem:[%s3221_s11] sm:$0xff]  ;;  %vm2352_vm0 = vmmov 0   ;;  %v1045_v10 = vld [vmem:[%s3221_s11 + $0x8] sm:$0xff]  ;;  %s3268_s26 = sld [smem:[#allocation24_spill]]  ;;  %vm1051_vm1 = vcmask 261120  }
  0x11   : > { %2145 = vmatprep.mubr.msk.bf16.mxu1 %vm2352_vm0, %v2351_v6  ;;  %2251 = vset.pattern.permute.xlu0 %v3232_v3  ;;  %v601_v8 = vpack.c.bf16 %v577_v5, %v576_v2  ;;  %v578_v9 = vld [vmem:[%s3216_s6 + $0x20] sm:$0xff]  ;;  %s3332_s25 = smov (!%p554_p3, %s2097_s25), 1  ;;  %v579_v11 = vld [vmem:[%s3216_s6 + $0x28] sm:$0xff]  ;;  %v1049_v12 = vpack.c.bf16 %v1045_v10, %v1044_v7  ;;  %v1046_v13 = vld [vmem:[%s3221_s11 + $0x10] sm:$0xff]  ;;  %vm619_vm2 = vcmask 523264   ;;  %v3233_v54 = vmov 1  }
  0x12   : > { %624 = vmatpush1.bf16.msra.mxu0 %v600_v4  ;;  %v1047_v14 = vld [vmem:[%s3221_s11 + $0x18] sm:$0xff]  ;;  %s2123_s19 = sshll.u32 %s3332_s25, 5  ;;  %s2124_s1 = sshll.u32 %s3332_s25, 4  ;;  %v1043_v16 = vld [vmem:[%s3215_s5] sm:$0xff]  ;;  %v602_v17 = vpack.c.bf16 %v579_v11, %v578_v9  ;;  %v580_v18 = vld [vmem:[%s3216_s6 + $0x30] sm:$0xff]  ;;  %2252 = vset.pattern.permute.xlu1 %v3233_v54 }
  0x13   : > { %625 = vmatprep.subr.bf16.mxu0 %v3232_v3  ;;  %2142 = vmatpush3.bf16.msra.mxu1 %v1049_v12  ;;  %v1050_v15 = vpack.c.bf16 %v1047_v14, %v1046_v13  ;;  %s3269_s25 = sld [smem:[#allocation25_spill]]  ;;  %s2534_s20 = scalar_lea.vmem %s3227_s17, %s2124_s1  ;;  %v581_v19 = vld [vmem:[%s3216_s6 + $0x38] sm:$0xff]  ;;  %v1048_v20 = vpack.c.bf16 %v1043_v16, %v1043_v16  ;;  %v582_v27 = vld [vmem:[%s3216_s6 + $0x40] sm:$0xff]  ;;  %v583_v28 = vld [vmem:[%s3216_s6 + $0x48] sm:$0xff] }
  0x14   : > { %2143 = vmatprep.subr.bf16.mxu1 %v2351_v6  ;;  %v603_v25 = vpack.c.bf16 %v581_v19, %v580_v18  ;;  %v604_v29 = vpack.c.bf16 %v583_v28, %v582_v27  ;;  %v584_v30 = vld [vmem:[%s3216_s6 + $0x50] sm:$0xff]  ;;  %v585_v31 = vld [vmem:[%s3216_s6 + $0x58] sm:$0xff]  ;;  %v586_v33 = vld [vmem:[%s3216_s6 + $0x60] sm:$0xff]  ;;  %v2359_v27 = vmov 7   ;;  %v2360_v28 = vmov 8   ;;  %s2362_s22 = smov 32  }
  0x15   : > { %v605_v32 = vpack.c.bf16 %v585_v31, %v584_v30  ;;  %v587_v34 = vld [vmem:[%s3216_s6 + $0x68] sm:$0xff]  ;;  %v588_v36 = vld [vmem:[%s3216_s6 + $0x70] sm:$0xff]  ;;  %v589_v37 = vld [vmem:[%s3216_s6 + $0x78] sm:$0xff]  ;;  %v682_v31 = vlaneseq  ;;  %s2363_s23 = smov 64  }
  0x16   : > { %s2525_s27 = scalar_lea.vmem %s3268_s26, %s2123_s19  ;;  %626 = vmatpush1.bf16.msra.mxu0 %v601_v8  ;;  %v606_v35 = vpack.c.bf16 %v587_v34, %v586_v33  ;;  %v607_v38 = vpack.c.bf16 %v589_v37, %v588_v36  ;;  %v590_v39 = vld [vmem:[%s3216_s6 + $0x80] sm:$0xff]  ;;  %v591_v40 = vld [vmem:[%s3216_s6 + $0x88] sm:$0xff]  ;;  %v592_v42 = vld [vmem:[%s3216_s6 + $0x90] sm:$0xff] }
  0x17   : > { %627 = vmatprep.subr.bf16.mxu0 %v3232_v3  ;;  %v571_v21 = vld [vmem:[%s2525_s27 + $0x8] sm:$0xff]  ;;  %2144 = vmatpush3.bf16.msra.mxu1 %v1050_v15  ;;  %v573_v22 = vld [vmem:[%s2525_s27 + $0x18] sm:$0xff]  ;;  %v608_v41 = vpack.c.bf16 %v591_v40, %v590_v39  ;;  %v594_v45 = vld [vmem:[%s3216_s6 + $0xa0] sm:$0xff] }
  0x18   : > { %v599_v26 = vpack.c.bf16 %v573_v22, %v571_v21  ;;  %v593_v43 = vld [vmem:[%s3216_s6 + $0x98] sm:$0xff]  ;;  %v595_v46 = vld [vmem:[%s3216_s6 + $0xa8] sm:$0xff]  ;;  %v596_v48 = vld [vmem:[%s3216_s6 + $0xb0] sm:$0xff] }
  0x19   : > { %s563_s0 = scalar_lea.vmem %s3269_s25, %s2124_s1  ;;  %v609_v44 = vpack.c.bf16 %v593_v43, %v592_v42  ;;  %v610_v47 = vpack.c.bf16 %v595_v46, %v594_v45  ;;  %v597_v49 = vld [vmem:[%s3216_s6 + $0xb8] sm:$0xff]  ;;  %v570_v51 = vld [vmem:[%s2525_s27] sm:$0xff]  ;;  %v572_v52 = vld [vmem:[%s2525_s27 + $0x10] sm:$0xff]  ;;  %s2354_s27 = smov 96  }
  0x1a   : > { %v2545_v23 = vld [vmem:[%s563_s0] sm:$0xff]   ;;  %v2547_v24 = vld [vmem:[%s563_s0 + $0x8] sm:$0xff]   ;;  %628 = vmatpush1.bf16.msra.mxu0 %v602_v17  ;;  %2146 = vmatmul.mubr.msk.bf16.vlgmr.msra.gmra.mrb[0].mxu1 %vm1051_vm1, %v1048_v20  ;;  %v611_v50 = vpack.c.bf16 %v597_v49, %v596_v48  ;;  %v598_v53 = vpack.c.bf16 %v572_v52, %v570_v51  ;;  %v1097_v0 = vld [vmem:[%s3220_s10 + $0x10] sm:$0xff]  ;;  %v3230_v20 = vmov 2  }
  0x1b   : > { %629 = vmatprep.subr.bf16.mxu0 %v3232_v3  ;;  %2109 = vmatprep.mubr.msk.bf16.mxu0 %vm619_vm2, %v599_v26  ;;  %v1095_v55 = vld [vmem:[%s3220_s10] sm:$0xff]  ;;  %v1096_v56 = vld [vmem:[%s3220_s10 + $0x8] sm:$0xff]  ;;  %v1098_v1 = vld [vmem:[%s3220_s10 + $0x18] sm:$0xff]  ;;  %v2358_v26 = vmov 5  }
  0x1c   : > { %v1099_v57 = vpack.c.bf16 %v1096_v56, %v1095_v55  ;;  %v1166_v2 = vld [vmem:[%s3222_s12] sm:$0xff]  ;;  %v1167_v4 = vld [vmem:[%s3222_s12 + $0x8] sm:$0xff]  ;;  %v1100_v5 = vpack.c.bf16 %v1098_v1, %v1097_v0  ;;  %v1168_v8 = vld [vmem:[%s3222_s12 + $0x10] sm:$0xff] }
  0x1d   : > { %v1170_v7 = vpack.c.bf16 %v1167_v4, %v1166_v2  ;;  %v1169_v9 = vld [vmem:[%s3222_s12 + $0x18] sm:$0xff]  ;;  %v2108_v11 = vld [vmem:[%s3217_s7] ss:$0 sm:$0xff]  ;;  %v2658_v22 = vld [vmem:[%s3212_s2 + $0x8] sm:$0xff] }
  0x1e   : > { %630 = vmatpush1.bf16.msra.mxu0 %v603_v25  ;;  %2151 = vmatprep.mubr.msk.bf16.mxu1 %vm1051_vm1, %v1099_v57  ;;  %v1171_v10 = vpack.c.bf16 %v1169_v9, %v1168_v8  ;;  %v666_v21 = vld [vmem:[%s3212_s2] sm:$0xff]  ;;  %v2357_v25 = vmov 4   ;;  %v669_v34 = vld [vmem:[%s3218_s8 + $0x8] sm:$0xf] }
  0x1f   : > { %631 = vmatprep.subr.bf16.mxu0 %v3232_v3 }
  0x22   : > { %632 = vmatpush1.bf16.msra.mxu0 %v604_v29  ;;  %v2361_v29 = vmov 6  }
  0x23   : > { %633 = vmatprep.subr.bf16.mxu0 %v3232_v3 }
  0x26   : > { %634 = vmatpush1.bf16.msra.mxu0 %v605_v32  ;;  %v2675_v32 = vshrl.u32 %v682_v31, 7 }
  0x27   : > { %635 = vmatprep.subr.bf16.mxu0 %v3232_v3 }
  0x28   : > { %v2678_v33 = vsub.s32 1, %v2675_v32  ;;  %v2706_v55 = vsub.s32 5, %v2675_v32  ;;  %v2709_v56 = vsub.s32 4, %v2675_v32  ;;  %vm860_vm3 = vcmp.lt.s32.totalorder %v2675_v32, 5 }
  0x29   : > { %vm908_vm4 = vcmp.lt.s32.totalorder %v2675_v32, 3  ;;  %vm885_vm5 = vcmp.lt.s32.totalorder %v2675_v32, 4  ;;  %vm931_vm6 = vcmp.lt.s32.totalorder %v2675_v32, 1  ;;  %vm968_vm7 = vcmp.lt.s32.totalorder %v2675_v32, 7 }
  0x2a   : > { %636 = vmatpush1.bf16.msra.mxu0 %v606_v35  ;;  %v2684_v35 = vsub.s32 0, %v2675_v32  ;;  %v734_v36 = vrot.slane %v669_v34, %v2678_v33  ;;  %3270 = vst [vmem:[#allocation2_spill] sm:$0xff] %v2706_v55  ;;  %3271 = vst [vmem:[#allocation3_spill] sm:$0xff] %v2709_v56 }
  0x2b   : > { %637 = vmatprep.subr.bf16.mxu0 %v3232_v3 }
  0x2c   : > { %v693_v37 = vrot.slane %v669_v34, %v2684_v35  ;;  %v749_v39 = vrot.slane %v734_v36, %v2678_v33 }
  0x2e   : > { %638 = vmatpush1.bf16.msra.mxu0 %v607_v38  ;;  %v2689_v38 = vsub.s32 2, %v2675_v32  ;;  %v708_v40 = vrot.slane %v693_v37, %v2684_v35 }
  0x2f   : > { %639 = vmatprep.subr.bf16.mxu0 %v3232_v3 }
  0x32   : > { %640 = vmatpush1.bf16.msra.mxu0 %v608_v41  ;;  %v781_v41 = vrot.slane %v669_v34, %v2689_v38 }
  0x33   : > { %641 = vmatprep.subr.bf16.mxu0 %v3232_v3 }
  0x34   : > { %v796_v48 = vrot.slane %v781_v41, %v2689_v38 }
  0x36   : > { %642 = vmatpush1.bf16.msra.mxu0 %v609_v44  ;;  %v2695_v44 = vsub.s32 3, %v2675_v32 }
  0x37   : > { %643 = vmatprep.subr.bf16.mxu0 %v3232_v3 }
  0x3a   : > { %644 = vmatpush1.bf16.msra.mxu0 %v610_v47  ;;  %v668_v47 = vld [vmem:[%s3218_s8] sm:$0xff] }
  0x3b   : > { %645 = vmatprep.subr.bf16.mxu0 %v3232_v3  ;;  %v730_v0 = vrot.slane %v668_v47, %v2706_v55  ;;  %v689_v2 = vrot.slane %v668_v47, %v2709_v56 }
  0x3e   : > { %646 = vmatpush1.bf16.msra.mxu0 %v611_v50  ;;  %v828_v50 = vrot.slane %v669_v34, %v2695_v44 }
  0x41   : > { %656 = vmatmul.mubr.bf16.vlgmr.msra.gmra.mrb[0].mxu0 %v598_v53  ;;  %v726_v53 = vrot.slane %v668_v47, %v2678_v33 }
  0x43   : > { %v741_v1 = vrot.slane %v726_v53, %v2678_v33 }
  0xed   : > { %v1089_v58 = vpop.f32.mrb[0].mxu1 }
  0xee   : > { %v1101_v59 = vpack.c.bf16 %v1089_v58, %v1089_v58  ;;  %v2147_v60 = vpop.f32.mrb[1].mxu1  ;;  %v685_v58 = vrot.slane %v668_v47, %v2684_v35 }
  0xef   : > { %v1092_v61 = vpop.f32.mrb[2].mxu1 }
  0xf0   : > { %v2148_v62 = vpop.f32.mrb[3].mxu1  ;;  %1173 = vrot.lane.b32.xlu0 %v1101_v59, %s2354_s27  ;;  %2179 = vmatprep.subr.msk.bf16.mxu1 %vm1051_vm1, %v1101_v59  ;;  %v1109_v63 = vsel %vm1051_vm1, %v1101_v59, 0  ;;  %v2714_v59 = vsub.s32 6, %v2675_v32  ;;  %v843_v61 = vrot.slane %v828_v50, %v2695_v44 }
  0xf1   : > { %2150 = vmatpush3.bf16.xpose.msra.mxu1 %v1109_v63  ;;  %v773_v62 = vrot.slane %v668_v47, %v2689_v38 }
  0xf2   : > { %2155 = vmatprep.subr.bf16.mxu1 %v2351_v6  ;;  %3272 = vst [vmem:[#allocation4_spill] sm:$0xff] %v2714_v59  ;;  %v777_v8 = vrot.slane %v668_v47, %v2714_v59 }
  0xf8   : > { %2152 = vmatmul.mubr.msk.bf16.vlgmr.msra.gmra.mrb[4].mxu1 %vm1051_vm1, %v1100_v5 }
  0xf9   : > { %2156 = vmatpush3.bf16.msra.mxu1 %v1170_v7  ;;  %2159 = vmatprep.mubr.msk.bf16.mxu1 %vm2352_vm0, %v2351_v6  ;;  %v700_v7 = vrot.slane %v685_v58, %v2684_v35 }
  0xfa   : > { %2157 = vmatprep.subr.bf16.mxu1 %v2351_v6  ;;  %v3228_v6 = vmov 3  }
  0xfd   : > { %2158 = vmatpush3.bf16.msra.mxu1 %v1171_v10  ;;  %v820_v10 = vrot.slane %v668_v47, %v2695_v44 }
 0x114   : > { %v657_v12 = vpop.f32.mrb[0].mxu0 }
 0x115   : > { %v658_v13 = vadd.f32 %v2108_v11, %v657_v12  ;;  %v659_v14 = vpop.f32.mrb[1].mxu0  ;;  %v2727_v12 = vsub.s32 7, %v2675_v32 }
 0x116   : > { %v660_v15 = vpop.f32.mrb[2].mxu0  ;;  %v788_v14 = vrot.slane %v773_v62, %v2689_v38 }
 0x117   : > { %v664_v16 = vmul.f32 0.18215, %v658_v13  ;;  %v662_v17 = vpop.f32.mrb[3].mxu0  ;;  %v661_v18 = vadd.f32 %v2108_v11, %v660_v15 }
 0x118   : > { %v704_v17 = vrot.slane %v689_v2, %v2684_v35 }
 0x119   : > { %716 = vperm.xlu1 %2252, %v664_v16   ;;  %672 = vperm.xlu0 %2251, %v664_v16   ;;  %v665_v19 = vmul.f32 0.18215, %v661_v18 }
 0x11d   : > { %2254 = vset.pattern.permute.xlu1 %v3232_v3  ;;  %2253 = vset.pattern.permute.xlu0 %v3230_v20 }
 0x11e   : > { %677 = vperm.xlu1 %2254, %v665_v19   ;;  %763 = vperm.xlu0 %2253, %v664_v16  }
 0x122   : > { %2255 = vset.pattern.permute.xlu1 %v3233_v54  ;;  %2258 = vset.pattern.permute.xlu0 %v3228_v6 }
 0x123   : > { %720 = vperm.xlu1 %2255, %v665_v19   ;;  %814 = vperm.xlu0 %2258, %v665_v19  }
 0x127   : > { %2256 = vset.pattern.permute.xlu1 %v3230_v20  ;;  %2260 = vset.pattern.permute.xlu0 %v3233_v54 }
 0x128   : > { %767 = vperm.xlu1 %2256, %v665_v19   ;;  %889 = vperm.xlu0 %2260, %v666_v21  }
 0x12c   : > { %2257 = vset.pattern.permute.xlu1 %v3228_v6  ;;  %2263 = vset.pattern.permute.xlu0 %v3230_v20 }
 0x12d   : > { %810 = vperm.xlu1 %2257, %v664_v16   ;;  %916 = vperm.xlu0 %2263, %v2658_v22   ;;  %v745_v16 = vrot.slane %v730_v0, %v2678_v33 }
 0x131   : > { %2259 = vset.pattern.permute.xlu1 %v3232_v3  ;;  %2265 = vset.pattern.permute.xlu0 %v2357_v25 }
 0x132   : > { %865 = vperm.xlu1 %2259, %v666_v21   ;;  %947 = vperm.xlu0 %2265, %v666_v21  }
 0x136   : > { %870 = vperm.xlu1 %2259, %v2658_v22   ;;  %2268 = vset.pattern.permute.xlu0 %v2358_v26 }
 0x137   : > { %976 = vperm.xlu0 %2268, %v2658_v22  }
 0x13a   : > { %2261 = vset.pattern.permute.xlu1 %v3233_v54 }
 0x13b   : > { %893 = vperm.xlu1 %2261, %v2658_v22   ;;  %2270 = vset.pattern.permute.xlu0 %v2359_v27 }
 0x13c   : > { %1016 = vperm.xlu0 %2270, %v666_v21  }
 0x13f   : > { %2262 = vset.pattern.permute.xlu1 %v3230_v20 }
 0x140   : > { %912 = vperm.xlu1 %2262, %v666_v21   ;;  %2273 = vset.pattern.permute.xlu0 %v2360_v28 }
 0x144   : > { %2264 = vset.pattern.permute.xlu1 %v3228_v6 }
 0x145   : > { %935 = vperm.xlu1 %2264, %v666_v21  }
 0x149   : > { %939 = vperm.xlu1 %2264, %v2658_v22  }
 0x14d   : > { %2266 = vset.pattern.permute.xlu1 %v2357_v25  ;;  %v792_v25 = vrot.slane %v777_v8, %v2689_v38 }
 0x14e   : > { %951 = vperm.xlu1 %2266, %v2658_v22  }
 0x152   : > { %2267 = vset.pattern.permute.xlu1 %v2358_v26  ;;  %v835_v26 = vrot.slane %v820_v10, %v2695_v44 }
 0x153   : > { %972 = vperm.xlu1 %2267, %v666_v21  }
 0x157   : > { %2269 = vset.pattern.permute.xlu1 %v2361_v29  ;;  %v824_v29 = vrot.slane %v668_v47, %v2727_v12 }
 0x158   : > { %994 = vperm.xlu1 %2269, %v666_v21  }
 0x15c   : > { %998 = vperm.xlu1 %2269, %v2658_v22  }
 0x160   : > { %2271 = vset.pattern.permute.xlu1 %v2359_v27 }
 0x161   : > { %1020 = vperm.xlu1 %2271, %v2658_v22  }
 0x162   : > { %v1174_v30 = vpop.permute.xlu0 %1173 }
 0x163   : > { %2160 = vmatmul.mubr.msk.bf16.vlgmr.msra.gmra.mrb[8].mxu1 %vm1051_vm1, %v1174_v30 }
 0x165   : > { %2272 = vset.pattern.permute.xlu1 %v2360_v28 }
 0x166   : > { %1032 = vperm.xlu1 %2272, %v666_v21  }
 0x198   : > { %v717_v42 = vpop.permute.xlu1 %716  ;;  %v673_v43 = vpop.permute.xlu0 %672 }
 0x199   : > { %v752_v45 = vmul.f32 %v749_v39, %v717_v42  ;;  %v711_v46 = vmul.f32 %v708_v40, %v673_v43  ;;  %v750_v19 = vmul.f32 %v741_v1, %v717_v42  ;;  %v709_v21 = vmul.f32 %v700_v7, %v673_v43 }
 0x19a   : > { %v751_v36 = vmul.f32 %v745_v16, %v717_v42  ;;  %v710_v37 = vmul.f32 %v704_v17, %v673_v43 }
 0x19b   : > { %v758_v49 = vadd.f32 %v752_v45, %v711_v46  ;;  %v756_v41 = vadd.f32 %v750_v19, %v709_v21  ;;  %v2804_v21 = vld [vmem:[%s3223_s13 + $0x18] sm:$0xff] }
 0x19c   : > { %v757_v47 = vadd.f32 %v751_v36, %v710_v37  ;;  %3278 = vst [vmem:[#allocation10_spill] sm:$0xff] %v2804_v21 }
 0x19d   : > { %v2702_v51 = vpop.permute.xlu1 %677  ;;  %v764_v52 = vpop.permute.xlu0 %763 }
 0x19e   : > { %v714_v57 = vmul.f32 %v708_v40, %v2702_v51  ;;  %v799_v60 = vmul.f32 %v796_v48, %v764_v52  ;;  %v712_v18 = vmul.f32 %v700_v7, %v2702_v51  ;;  %v797_v34 = vmul.f32 %v788_v14, %v764_v52 }
 0x19f   : > { %v798_v46 = vmul.f32 %v792_v25, %v764_v52 }
 0x1a0   : > { %v805_v63 = vadd.f32 %v799_v60, %v758_v49  ;;  %v839_v49 = vrot.slane %v824_v29, %v2695_v44 }
 0x1a1   : > { %v804_v42 = vadd.f32 %v798_v46, %v757_v47 }
 0x1a2   : > { %v721_v4 = vpop.permute.xlu1 %720  ;;  %v2721_v5 = vpop.permute.xlu0 %814 }
 0x1a3   : > { %v755_v9 = vmul.f32 %v749_v39, %v721_v4  ;;  %v753_v11 = vmul.f32 %v741_v1, %v721_v4  ;;  %v849_v13 = vmul.f32 %v843_v61, %v2721_v5  ;;  %v847_v45 = vmul.f32 %v835_v26, %v2721_v5 }
 0x1a4   : > { %v848_v19 = vmul.f32 %v839_v49, %v2721_v5  ;;  %v2784_v5 = vld [vmem:[%s3219_s9 + $0x8] sm:$0xf] }
 0x1a5   : > { %v761_v15 = vadd.f32 %v755_v9, %v714_v57  ;;  %v759_v28 = vadd.f32 %v753_v11, %v712_v18  ;;  %v803_v57 = vadd.f32 %v797_v34, %v756_v41  ;;  %v754_v11 = vmul.f32 %v745_v16, %v721_v4  ;;  %3274 = vst [vmem:[#allocation6_spill] sm:$0xff] %v2784_v5  ;;  %v2789_v16 = vld [vmem:[%s3223_s13] sm:$0xff] }
 0x1a6   : > { %3275 = vst [vmem:[#allocation7_spill] sm:$0xff] %v2789_v16 }
 0x1a7   : > { %v768_v27 = vpop.permute.xlu1 %767 }
 0x1a8   : > { %v800_v30 = vmul.f32 %v788_v14, %v768_v27  ;;  %v802_v31 = vmul.f32 %v796_v48, %v768_v27  ;;  %v801_v14 = vmul.f32 %v792_v25, %v768_v27  ;;  %v2815_v27 = vld [vmem:[%s3224_s14] ss:$0 sm:$0xff] }
 0x1a9   : > { %3279 = vst [vmem:[#allocation11_spill] sm:$0xff] %v2815_v27 }
 0x1aa   : > { %v806_v39 = vadd.f32 %v800_v30, %v759_v28  ;;  %v808_v40 = vadd.f32 %v802_v31, %v761_v15 }
 0x1ac   : > { %v811_v50 = vpop.permute.xlu1 %810  ;;  %v855_v53 = vadd.f32 %v849_v13, %v808_v40  ;;  %v853_v58 = vadd.f32 %v847_v45, %v806_v39  ;;  %v713_v13 = vmul.f32 %v704_v17, %v2702_v51  ;;  %v2779_v51 = vld [vmem:[%s3219_s9] sm:$0xff]  ;;  %v2799_v17 = vld [vmem:[%s3223_s13 + $0x10] sm:$0xff] }
 0x1ad   : > { %v844_v60 = vmul.f32 %v835_v26, %v811_v50  ;;  %v846_v62 = vmul.f32 %v843_v61, %v811_v50  ;;  %v845_v0 = vmul.f32 %v839_v49, %v811_v50  ;;  %3273 = vst [vmem:[#allocation5_spill] sm:$0xff] %v2779_v51  ;;  %3277 = vst [vmem:[#allocation9_spill] sm:$0xff] %v2799_v17 }
 0x1ae   : > { %v857_v2 = vrot.slane %v853_v58, 3  ;;  %v1028_v7 = vrot.slane %v855_v53, 5  ;;  %v760_v15 = vadd.f32 %v754_v11, %v713_v13 }
 0x1af   : > { %v850_v48 = vadd.f32 %v844_v60, %v803_v57  ;;  %v852_v1 = vadd.f32 %v846_v62, %v805_v63  ;;  %v2743_v8 = vadd.f32 %v845_v0, %v804_v42  ;;  %v2843_v60 = vpop.permute.xlu0 %889 }
 0x1b0   : > { %v807_v18 = vadd.f32 %v801_v14, %v760_v15 }
 0x1b1   : > { %v856_v43 = vrot.slane %v850_v48, 3  ;;  %923 = vrot.lane.b32.xlu1 %v850_v48, %s2362_s22  ;;  %877 = vrot.lane.b32.xlu0 %v850_v48, %s2354_s27  ;;  %v1027_v52 = vrot.slane %v852_v1, 5  ;;  %v2829_v45 = vpop.permute.xlu1 %865 }
 0x1b2   : > { %v2768_v4 = vadd.f32 %v848_v19, %v807_v18  ;;  %3281 = vst [vmem:[#allocation13_spill] sm:$0xff] %v2829_v45 }
 0x1b3   : > { %v2747_v61 = vsel %vm860_vm3, %v857_v2, %v856_v43  ;;  %v2751_v63 = vsel %vm860_vm3, %v856_v43, %v857_v2  ;;  %v2755_v9 = vsel %vm908_vm4, %v1027_v52, %v1028_v7  ;;  %v2759_v10 = vsel %vm908_vm4, %v1028_v7, %v1027_v52  ;;  %v2847_v47 = vpop.permute.xlu0 %916 }
 0x1b5   : > { %983 = vrot.lane.b32.xlu1 %v2743_v8, %s2363_s23  ;;  %900 = vrot.lane.b32.xlu0 %v850_v48, %s2363_s23  ;;  %v2831_v46 = vpop.permute.xlu1 %870 }
 0x1b6   : > { %3282 = vst [vmem:[#allocation14_spill] sm:$0xff] %v2831_v46 }
 0x1b7   : > { %v2851_v48 = vpop.permute.xlu0 %947 }
 0x1b9   : > { %960 = vrot.lane.b32.xlu0 %v2743_v8, %s2354_s27  ;;  %879 = vrot.lane.b32.xlu1 %v853_v58, %s2354_s27 }
 0x1ba   : > { %v2833_v49 = vpop.permute.xlu1 %893 }
 0x1bb   : > { %3283 = vst [vmem:[#allocation15_spill] sm:$0xff] %v2833_v49  ;;  %v2855_v42 = vpop.permute.xlu0 %976 }
 0x1bd   : > { %925 = vrot.lane.b32.xlu0 %v853_v58, %s2362_s22  ;;  %902 = vrot.lane.b32.xlu1 %v853_v58, %s2363_s23 }
 0x1bf   : > { %v2835_v50 = vpop.permute.xlu1 %912  ;;  %v2859_v2 = vpop.permute.xlu0 %1016 }
 0x1c1   : > { %985 = vrot.lane.b32.xlu0 %v2768_v4, %s2363_s23  ;;  %962 = vrot.lane.b32.xlu1 %v2768_v4, %s2354_s27 }
 0x1c4   : > { %v2837_v53 = vpop.permute.xlu1 %935 }
 0x1c5   : > { %1036 = vperm.xlu0 %2273, %v2658_v22   ;;  %1005 = vrot.lane.b32.xlu1 %v2743_v8, %s2362_s22  ;;  %v2794_v22 = vld [vmem:[%s3223_s13 + $0x8] sm:$0xff] }
 0x1c6   : > { %3276 = vst [vmem:[#allocation8_spill] sm:$0xff] %v2794_v22 }
 0x1c8   : > { %v2839_v57 = vpop.permute.xlu1 %939 }
 0x1c9   : > { %1007 = vrot.lane.b32.xlu1 %v2768_v4, %s2362_s22  ;;  %s2928_s22 = smov 0  }
 0x1cb   : > { %v2153_v28 = vpop.f32.mrb[4].mxu1 }
 0x1cc   : > { %v2817_v29 = vmul.f32 0.17677669, %v2153_v28  ;;  %v1145_v30 = vpop.f32.mrb[5].mxu1 }
 0x1cd   : > { %v2819_v31 = vmul.f32 0.17677669, %v1145_v30  ;;  %v2154_v34 = vpop.f32.mrb[6].mxu1  ;;  %v2841_v58 = vpop.permute.xlu1 %951 }
 0x1ce   : > { %3280 = vst [vmem:[#allocation12_spill] sm:$0xff] %v2817_v29  ;;  %v2821_v36 = vmul.f32 0.17677669, %v2154_v34  ;;  %v1148_v37 = vpop.f32.mrb[7].mxu1 }
 0x1cf   : > { %v2823_v39 = vmul.f32 0.17677669, %v1148_v37 }
 0x1d2   : > { %v2845_v62 = vpop.permute.xlu1 %972 }
 0x1d7   : > { %v2849_v0 = vpop.permute.xlu1 %994 }
 0x1db   : > { %v2853_v1 = vpop.permute.xlu1 %998 }
 0x1e0   : > { %v2857_v43 = vpop.permute.xlu1 %1020 }
 0x1e1   : > { %3284 = vst [vmem:[#allocation16_spill] sm:$0xff] %v2857_v43 }
 0x1e5   : > { %v2861_v52 = vpop.permute.xlu1 %1032 }
 0x1e6   : > { %3285 = vst [vmem:[#allocation17_spill] sm:$0xff] %v2861_v52 }
 0x223   : > { %v924_v7 = vpop.permute.xlu1 %923  ;;  %v878_v11 = vpop.permute.xlu0 %877 }
 0x224   : > { %v883_v19 = vrot.slane %v878_v11, 4  ;;  %v929_v54 = vrot.slane %v924_v7, 7  ;;  %v873_v11 = vmul.f32 %v2829_v45, %v2747_v61 }
 0x227   : > { %v984_v13 = vpop.permute.xlu1 %983  ;;  %v901_v14 = vpop.permute.xlu0 %900 }
 0x228   : > { %v906_v26 = vrot.slane %v901_v14, 5 }
 0x22b   : > { %v880_v15 = vpop.permute.xlu1 %879  ;;  %v961_v18 = vpop.permute.xlu0 %960 }
 0x22c   : > { %v884_v28 = vrot.slane %v880_v15, 4  ;;  %v874_v15 = vmul.f32 %v2831_v46, %v2751_v63  ;;  %v966_v41 = vrot.slane %v961_v18, 1 }
 0x22e   : > { %v886_v30 = vsel %vm885_vm5, %v883_v19, %v884_v28  ;;  %v887_v34 = vsel %vm885_vm5, %v884_v28, %v883_v19 }
 0x22f   : > { %v896_v37 = vmul.f32 %v2843_v60, %v887_v34  ;;  %v897_v6 = vmul.f32 %v2833_v49, %v886_v30  ;;  %v903_v20 = vpop.permute.xlu1 %902  ;;  %v926_v3 = vpop.permute.xlu0 %925 }
 0x230   : > { %v907_v40 = vrot.slane %v903_v20, 5  ;;  %v930_v25 = vrot.slane %v926_v3, 7 }
 0x231   : > { %v898_v20 = vadd.f32 %v896_v37, %v873_v11  ;;  %v899_v14 = vadd.f32 %v897_v6, %v874_v15  ;;  %v954_v6 = vmul.f32 %v2851_v48, %v2743_v8  ;;  %v989_v15 = vrot.slane %v984_v13, 3 }
 0x232   : > { %v909_v19 = vsel %vm908_vm4, %v906_v26, %v907_v40  ;;  %v910_v28 = vsel %vm908_vm4, %v907_v40, %v906_v26  ;;  %v932_v7 = vsel %vm931_vm6, %v929_v54, %v930_v25  ;;  %v933_v3 = vsel %vm931_vm6, %v930_v25, %v929_v54 }
 0x233   : > { %v919_v61 = vmul.f32 %v2835_v50, %v910_v28  ;;  %v920_v63 = vmul.f32 %v2847_v47, %v909_v19  ;;  %v963_v30 = vpop.permute.xlu1 %962  ;;  %v986_v34 = vpop.permute.xlu0 %985  ;;  %v942_v26 = vmul.f32 %v2837_v53, %v933_v3  ;;  %v943_v40 = vmul.f32 %v2839_v57, %v932_v7 }
 0x234   : > { %v967_v27 = vrot.slane %v963_v30, 1  ;;  %v990_v54 = vrot.slane %v986_v34, 3  ;;  %v955_v25 = vmul.f32 %v2841_v58, %v2768_v4 }
 0x235   : > { %v921_v46 = vadd.f32 %v919_v61, %v898_v20  ;;  %v922_v45 = vadd.f32 %v920_v63, %v899_v14 }
 0x236   : > { %v969_v49 = vsel %vm968_vm7, %v966_v41, %v967_v27  ;;  %v2894_v19 = vpop.f32.mrb[8].mxu1  ;;  %v970_v14 = vsel %vm968_vm7, %v967_v27, %v966_v41  ;;  %v991_v8 = vsel %vm860_vm3, %v989_v15, %v990_v54 }
 0x237   : > { %v944_v37 = vadd.f32 %v942_v26, %v921_v46  ;;  %v945_v11 = vadd.f32 %v943_v40, %v922_v45  ;;  %v1006_v18 = vpop.permute.xlu1 %1005  ;;  %3286 = vst [vmem:[#allocation18_spill] sm:$0xff] %v2894_v19  ;;  %v979_v7 = vmul.f32 %v2845_v62, %v969_v49  ;;  %v2161_v20 = vpop.f32.mrb[9].mxu1  ;;  %v980_v13 = vmul.f32 %v2855_v42, %v970_v14 }
 0x238   : > { %v1215_v61 = vpop.f32.mrb[10].mxu1  ;;  %v1011_v45 = vrot.slane %v1006_v18, 4  ;;  %v1001_v34 = vmul.f32 %v2849_v0, %v991_v8  ;;  %v992_v49 = vsel %vm860_vm3, %v990_v54, %v989_v15 }
 0x239   : > { %v956_v28 = vadd.f32 %v954_v6, %v944_v37  ;;  %v957_v3 = vadd.f32 %v955_v25, %v945_v11  ;;  %v2162_v46 = vpop.f32.mrb[11].mxu1  ;;  %v1039_v25 = vmul.f32 %v2861_v52, %v2755_v9  ;;  %v1002_v37 = vmul.f32 %v2853_v1, %v992_v49 }
 0x23b   : > { %v981_v63 = vadd.f32 %v979_v7, %v956_v28  ;;  %v1008_v4 = vpop.permute.xlu1 %1007  ;;  %v982_v41 = vadd.f32 %v980_v13, %v957_v3 }
 0x23c   : > { %v1012_v30 = vrot.slane %v1008_v4, 4 }
 0x23d   : > { %v1003_v40 = vadd.f32 %v1001_v34, %v981_v63  ;;  %v1004_v54 = vadd.f32 %v1002_v37, %v982_v41 }
 0x23e   : > { %v1013_v26 = vsel %vm885_vm5, %v1011_v45, %v1012_v30  ;;  %v1014_v27 = vsel %vm885_vm5, %v1012_v30, %v1011_v45 }
 0x23f   : > { %v1023_v6 = vmul.f32 %v2859_v2, %v1013_v26  ;;  %v1024_v11 = vmul.f32 %v2857_v43, %v1014_v27 }
 0x241   : > { %v1025_v18 = vadd.f32 %v1023_v6, %v1003_v40  ;;  %v1026_v7 = vadd.f32 %v1024_v11, %v1004_v54 }
 0x243   : > { %v2914_v28 = vadd.f32 %v1039_v25, %v1025_v18 }
 0x244   : > { %v2916_v15 = vpop.permute.xlu0 %1036 }
 0x245   : > { %3287 = vst [vmem:[#allocation19_spill] sm:$0xff] %v2914_v28  ;;  %3288 = vst [vmem:[#allocation20_spill] sm:$0xff] %v2916_v15  ;;  %v1040_v3 = vmul.f32 %v2916_v15, %v2759_v10 }
 0x247   : > { %v2920_v20 = vadd.f32 %v1040_v3, %v1026_v7 }
 0x249   : > { %3289 = vst [vmem:[#allocation21_spill] sm:$0xff] %v2920_v20 }
 0x24a LB: >> { %v3290_v51 = vld [vmem:[#allocation5_spill] sm:$0xff]  ;;  %v3291_v5 = vld [vmem:[#allocation6_spill] sm:$0xff]  ;;  %3292 = vst [vmem:[#allocation22_spill] sm:$0xff] %v2340_v24  ;;  %3293 = vst [vmem:[#allocation23_spill] sm:$0xff] %v2344_v23  ;;  %v3245_v9 = vmov 1   ;;  %v2365_v10 = vmov 0   ;;  %s1237_s30 = scalar_lea.vmem %s3214_s4, %s2348_s22  ;;  %s1922_s19 = scalar_lea.vmem %s3213_s3, %s2348_s22  ;;  %v2344_v23 = vphi %v2545_v23, %v3326_v23   ;;  %v2340_v24 = vphi %v2547_v24, %v3325_v24   ;;  %s2348_s22 = sphi %s2928_s22, %s1234_s22  }
 0x24b   : >> { %2275 = vset.pattern.permute.xlu1 %v3245_v9  ;;  %2274 = vset.pattern.permute.xlu0 %v2365_v10  ;;  %v3243_v14 = vmov 2   ;;  %v3241_v8 = vmov 3   ;;  %v1303_v61 = vrot.slane %v3291_v5, %v2678_v33  ;;  %v1262_v63 = vrot.slane %v3291_v5, %v2684_v35  ;;  %v3294_v55 = vld [vmem:[#allocation2_spill] sm:$0xff]  ;;  %v3295_v56 = vld [vmem:[#allocation3_spill] sm:$0xff]  ;;  %v3296_v59 = vld [vmem:[#allocation4_spill] sm:$0xff]  ;;  %s2368_s28 = smov 64  }
 0x24c   : >> { %1285 = vperm.xlu1 %2275, %v2344_v23   ;;  %1241 = vperm.xlu0 %2274, %v2344_v23   ;;  %v1295_v13 = vrot.slane %v3290_v51, %v2678_v33  ;;  %v1254_v49 = vrot.slane %v3290_v51, %v2684_v35  ;;  %v1342_v27 = vrot.slane %v3290_v51, %v2689_v38  ;;  %s2369_s29 = smov 96   ;;  %s2370_s25 = smov 32   ;;  %vm2372_vm8 = vmmov 0   ;;  %v3298_v22 = vld [vmem:[#allocation8_spill] sm:$0xff]  ;;  %v3299_v16 = vld [vmem:[#allocation7_spill] sm:$0xff]  ;;  %v3303_v21 = vld [vmem:[#allocation10_spill] sm:$0xff] }
 0x24d   : >> { %v1318_v4 = vrot.slane %v1303_v61, %v2678_v33  ;;  %v1277_v46 = vrot.slane %v1262_v63, %v2684_v35  ;;  %v1350_v41 = vrot.slane %v3291_v5, %v2689_v38  ;;  %v1397_v61 = vrot.slane %v3291_v5, %v2695_v44  ;;  %v3301_v29 = vld [vmem:[#allocation12_spill] sm:$0xff]  ;;  %v3304_v17 = vld [vmem:[#allocation9_spill] sm:$0xff]  ;;  %s2377_s23 = smov 127   ;;  %s2378_s1 = smov 124  }
 0x24e   : >> { %v1310_v37 = vrot.slane %v1295_v13, %v2678_v33  ;;  %v1269_v11 = vrot.slane %v1254_v49, %v2684_v35  ;;  %v1357_v7 = vrot.slane %v1342_v27, %v2689_v38  ;;  %v1299_v63 = vrot.slane %v3290_v51, %v3294_v55  ;;  %s2379_s26 = smov 120   ;;  %s2382_s0 = smov 104  }
 0x24f   : >> { %v1365_v3 = vrot.slane %v1350_v41, %v2689_v38  ;;  %v1412_v55 = vrot.slane %v1397_v61, %v2695_v44  ;;  %vm1598_vm9 = vcmask 64512   ;;  %s2383_s27 = smov 100   ;;  %s1234_s22 = sadd.s32 1, %s2348_s22  }
 0x250   : >> { %1289 = vperm.xlu1 %2275, %v2340_v24   ;;  %1246 = vperm.xlu0 %2274, %v2340_v24   ;;  %p1231_p4 = scmp.ge.s32.totalorder %s1234_s22, 4  }
 0x254   : >> { %2277 = vset.pattern.permute.xlu1 %v3243_v14  ;;  %2276 = vset.pattern.permute.xlu0 %v3243_v14 }
 0x255   : >> { %1336 = vperm.xlu1 %2277, %v2340_v24   ;;  %1332 = vperm.xlu0 %2276, %v2344_v23  }
 0x259   : >> { %2278 = vset.pattern.permute.xlu1 %v3241_v8  ;;  %2279 = vset.pattern.permute.xlu0 %v3241_v8  ;;  %v1346_v8 = vrot.slane %v3290_v51, %v3296_v59 }
 0x25a   : >> { %1379 = vperm.xlu1 %2278, %v2344_v23   ;;  %1383 = vperm.xlu0 %2279, %v2340_v24  }
 0x25b   : >> { %v1361_v59 = vrot.slane %v1346_v8, %v2689_v38 }
 0x25e   : >> { %2280 = vset.pattern.permute.xlu1 %v2365_v10  ;;  %2285 = vset.pattern.permute.xlu0 %v2365_v10  ;;  %v1389_v10 = vrot.slane %v3290_v51, %v2695_v44 }
 0x260   : >> { %v1404_v23 = vrot.slane %v1389_v10, %v2695_v44 }
 0x2cb   : >> { %v1286_v45 = vpop.permute.xlu1 %1285  ;;  %v1242_v30 = vpop.permute.xlu0 %1241 }
 0x2cc   : >> { %v1321_v34 = vmul.f32 %v1318_v4, %v1286_v45  ;;  %v1280_v26 = vmul.f32 %v1277_v46, %v1242_v30  ;;  %v1319_v49 = vmul.f32 %v1310_v37, %v1286_v45 }
 0x2ce   : >> { %v1327_v40 = vadd.f32 %v1321_v34, %v1280_v26  ;;  %v1278_v26 = vmul.f32 %v1269_v11, %v1242_v30 }
 0x2cf   : >> { %v2966_v6 = vpop.permute.xlu1 %1289  ;;  %v2968_v25 = vpop.permute.xlu0 %1246 }
 0x2d0   : >> { %v1324_v18 = vmul.f32 %v1318_v4, %v2966_v6  ;;  %v1283_v54 = vmul.f32 %v1277_v46, %v2968_v25  ;;  %v1322_v13 = vmul.f32 %v1310_v37, %v2966_v6  ;;  %v1281_v34 = vmul.f32 %v1269_v11, %v2968_v25 }
 0x2d1   : >> { %v1258_v46 = vrot.slane %v3290_v51, %v3295_v56  ;;  %v1393_v11 = vrot.slane %v3290_v51, %v2727_v12  ;;  %v1325_v19 = vadd.f32 %v1319_v49, %v1278_v26 }
 0x2d2   : >> { %v1330_v4 = vadd.f32 %v1324_v18, %v1283_v54  ;;  %v1314_v18 = vrot.slane %v1299_v63, %v2678_v33  ;;  %v1328_v37 = vadd.f32 %v1322_v13, %v1281_v34 }
 0x2d3   : >> { %v1273_v56 = vrot.slane %v1258_v46, %v2684_v35  ;;  %v1408_v63 = vrot.slane %v1393_v11, %v2695_v44 }
 0x2d4   : >> { %v1337_v27 = vpop.permute.xlu1 %1336  ;;  %v1333_v41 = vpop.permute.xlu0 %1332  ;;  %v1320_v43 = vmul.f32 %v1314_v18, %v1286_v45 }
 0x2d5   : >> { %v1369_v14 = vmul.f32 %v1357_v7, %v1337_v27  ;;  %v1371_v9 = vmul.f32 %v1365_v3, %v1337_v27  ;;  %v1366_v5 = vmul.f32 %v1357_v7, %v1333_v41  ;;  %v1368_v24 = vmul.f32 %v1365_v3, %v1333_v41 }
 0x2d6   : >> { %v1279_v13 = vmul.f32 %v1273_v56, %v1242_v30  ;;  %v1367_v49 = vmul.f32 %v1361_v59, %v1333_v41  ;;  %v1282_v45 = vmul.f32 %v1273_v56, %v2968_v25  ;;  %v2371_v56 = vmov 0.0  }
 0x2d7   : >> { %v1377_v54 = vadd.f32 %v1371_v9, %v1330_v4  ;;  %v1374_v20 = vadd.f32 %v1368_v24, %v1327_v40  ;;  %v1375_v28 = vadd.f32 %v1369_v14, %v1328_v37  ;;  %v1372_v15 = vadd.f32 %v1366_v5, %v1325_v19  ;;  %2163 = vmatprep.subr.bf16.mxu0 %v2371_v56 }
 0x2d8   : >> { %v1326_v14 = vadd.f32 %v1320_v43, %v1279_v13  ;;  %v1323_v43 = vmul.f32 %v1314_v18, %v2966_v6  ;;  %v1370_v40 = vmul.f32 %v1361_v59, %v1337_v27  ;;  %2167 = vmatprep.mubr.msk.bf16.mxu0 %vm2372_vm8, %v2371_v56  ;;  %v3297_v59 = vpack.c.bf16 %v2823_v39, %v2819_v31  ;;  %v1942_v31 = vld [vmem:[%s3225_s15] sm:$0xf] (%p1231_p4) }
 0x2d9   : >> { %v1380_v7 = vpop.permute.xlu1 %1379  ;;  %v1384_v3 = vpop.permute.xlu0 %1383  ;;  %2171 = vmatprep.subr.bf16.mxu1 %v2371_v56  ;;  %2175 = vmatprep.mubr.msk.bf16.mxu1 %vm2372_vm8, %v2371_v56  ;;  %v3302_v6 = vpack.c.bf16 %v2821_v36, %v3301_v29  ;;  %v3305_v25 = vpack.c.bf16 %v3303_v21, %v3304_v17  ;;  %v3321_v29 = vld [vmem:[#allocation4_spill] sm:$0xff] }
 0x2da   : >> { %v1413_v10 = vmul.f32 %v1404_v23, %v1380_v7  ;;  %v1415_v52 = vmul.f32 %v1412_v55, %v1380_v7  ;;  %v1416_v61 = vmul.f32 %v1404_v23, %v1384_v3  ;;  %v1418_v9 = vmul.f32 %v1412_v55, %v1384_v3  ;;  %2164 = vmatpush3.bf16.msra.mxu0 %v3297_v59 }
 0x2db   : >> { %v1414_v8 = vmul.f32 %v1408_v63, %v1380_v7  ;;  %v1329_v26 = vadd.f32 %v1323_v43, %v1282_v45  ;;  %v1417_v41 = vmul.f32 %v1408_v63, %v1384_v3  ;;  %2165 = vmatprep.subr.bf16.mxu0 %v2371_v56 }
 0x2dc   : >> { %v1419_v34 = vadd.f32 %v1413_v10, %v1372_v15  ;;  %v1421_v4 = vadd.f32 %v1415_v52, %v1374_v20  ;;  %v1422_v51 = vadd.f32 %v1416_v61, %v1375_v28  ;;  %v1424_v46 = vadd.f32 %v1418_v9, %v1377_v54 }
 0x2dd   : >> { %v1373_v20 = vadd.f32 %v1367_v49, %v1326_v14  ;;  %v1376_v37 = vadd.f32 %v1370_v40, %v1329_v26 }
 0x2de   : >> { %v1523_v24 = vrot.slane %v1421_v4, 5  ;;  %1447 = vrot.lane.b32.xlu0 %v1419_v34, %s2368_s28  ;;  %1433 = vrot.lane.b32.xlu1 %v1419_v34, %s2369_s29  ;;  %v1425_v5 = vrot.slane %v1419_v34, 3  ;;  %v1426_v19 = vrot.slane %v1422_v51, 3  ;;  %v1524_v23 = vrot.slane %v1424_v46, 5  ;;  %v3306_v46 = vld [vmem:[#allocation15_spill] sm:$0xff] }
 0x2df   : >> { %v3013_v30 = vadd.f32 %v1414_v8, %v1373_v20  ;;  %v1423_v54 = vadd.f32 %v1417_v41, %v1376_v37  ;;  %2166 = vmatpush3.bf16.msra.mxu0 %v3302_v6  ;;  %v3309_v20 = vld [vmem:[#allocation14_spill] sm:$0xff] }
 0x2e0   : >> { %v1427_v55 = vsel %vm860_vm3, %v1425_v5, %v1426_v19  ;;  %v1428_v52 = vsel %vm860_vm3, %v1426_v19, %v1425_v5  ;;  %v3004_v28 = vsel %vm908_vm4, %v1523_v24, %v1524_v23  ;;  %v3008_v15 = vsel %vm908_vm4, %v1524_v23, %v1523_v24  ;;  %v3307_v23 = vld [vmem:[#allocation13_spill] sm:$0xff] }
 0x2e1   : >> { %v3308_v14 = vmov %v3307_v23  ;;  %v1429_v8 = vmul.f32 %v1428_v52, %v3307_v23  ;;  %v1430_v43 = vmul.f32 %v1427_v55, %v3309_v20 }
 0x2e2   : >> { %1461 = vrot.lane.b32.xlu0 %v1419_v34, %s2370_s25  ;;  %1435 = vrot.lane.b32.xlu1 %v1422_v51, %s2369_s29 }
 0x2e6   : >> { %1481 = vrot.lane.b32.xlu0 %v3013_v30, %s2369_s29  ;;  %1449 = vrot.lane.b32.xlu1 %v1422_v51, %s2368_s28 }
 0x2ea   : >> { %1495 = vrot.lane.b32.xlu0 %v3013_v30, %s2368_s28  ;;  %1463 = vrot.lane.b32.xlu1 %v1422_v51, %s2370_s25  ;;  %v3300_v51 = vpack.c.bf16 %v3298_v22, %v3299_v16 }
 0x2ec   : >> { %2172 = vmatpush3.bf16.msra.mxu1 %v3300_v51 }
 0x2ed   : >> { %2173 = vmatprep.subr.bf16.mxu1 %v2371_v56 }
 0x2ee   : >> { %1509 = vrot.lane.b32.xlu0 %v3013_v30, %s2370_s25  ;;  %1483 = vrot.lane.b32.xlu1 %v1423_v54, %s2369_s29 }
 0x2f0   : >> { %2174 = vmatpush3.bf16.msra.mxu1 %v3305_v25 }
 0x2f2   : >> { %1497 = vrot.lane.b32.xlu1 %v1423_v54, %s2368_s28  ;;  %s2380_s28 = smov 116  }
 0x2f6   : >> { %1511 = vrot.lane.b32.xlu1 %v1423_v54, %s2370_s25  ;;  %s2381_s25 = smov 108  }
 0x350   : >> { %v1434_v27 = vpop.permute.xlu1 %1433  ;;  %v1448_v18 = vpop.permute.xlu0 %1447 }
 0x351   : >> { %v1439_v3 = vrot.slane %v1434_v27, 4  ;;  %v1453_v13 = vrot.slane %v1448_v18, 5 }
 0x354   : >> { %v1436_v11 = vpop.permute.xlu1 %1435  ;;  %v1462_v7 = vpop.permute.xlu0 %1461 }
 0x355   : >> { %v1440_v10 = vrot.slane %v1436_v11, 4  ;;  %v1467_v41 = vrot.slane %v1462_v7, 7 }
 0x357   : >> { %v1441_v61 = vsel %vm885_vm5, %v1439_v3, %v1440_v10  ;;  %v1442_v63 = vsel %vm885_vm5, %v1440_v10, %v1439_v3 }
 0x358   : >> { %v1450_v9 = vpop.permute.xlu1 %1449  ;;  %v1443_v4 = vmul.f32 %v1442_v63, %v2843_v60  ;;  %v1444_v49 = vmul.f32 %v1441_v61, %v3306_v46  ;;  %v1482_v24 = vpop.permute.xlu0 %1481  ;;  %v1475_v63 = vmul.f32 %v3013_v30, %v2851_v48 }
 0x359   : >> { %v1454_v34 = vrot.slane %v1450_v9, 5  ;;  %v1487_v3 = vrot.slane %v1482_v24, 1  ;;  %v1476_v9 = vmul.f32 %v1423_v54, %v2841_v58 }
 0x35a   : >> { %v1445_v56 = vadd.f32 %v1443_v4, %v1429_v8  ;;  %v1446_v59 = vadd.f32 %v1444_v49, %v1430_v43 }
 0x35b   : >> { %v1455_v5 = vsel %vm908_vm4, %v1453_v13, %v1454_v34  ;;  %v1456_v19 = vsel %vm908_vm4, %v1454_v34, %v1453_v13 }
 0x35c   : >> { %v1457_v45 = vmul.f32 %v1456_v19, %v2835_v50  ;;  %v1458_v40 = vmul.f32 %v1455_v5, %v2847_v47  ;;  %v1464_v26 = vpop.permute.xlu1 %1463  ;;  %v1496_v18 = vpop.permute.xlu0 %1495 }
 0x35d   : >> { %v1468_v37 = vrot.slane %v1464_v26, 7  ;;  %v1501_v19 = vrot.slane %v1496_v18, 3 }
 0x35e   : >> { %v1459_v25 = vadd.f32 %v1457_v45, %v1445_v56  ;;  %v1460_v27 = vadd.f32 %v1458_v40, %v1446_v59 }
 0x35f   : >> { %v1469_v51 = vsel %vm931_vm6, %v1467_v41, %v1468_v37  ;;  %v1470_v6 = vsel %vm931_vm6, %v1468_v37, %v1467_v41 }
 0x360   : >> { %v1471_v52 = vmul.f32 %v1470_v6, %v2837_v53  ;;  %v1472_v55 = vmul.f32 %v1469_v51, %v2839_v57  ;;  %v1484_v11 = vpop.permute.xlu1 %1483  ;;  %v1510_v43 = vpop.permute.xlu0 %1509 }
 0x361   : >> { %v1488_v10 = vrot.slane %v1484_v11, 1  ;;  %v1515_v41 = vrot.slane %v1510_v43, 4  ;;  %v3311_v11 = vld [vmem:[#allocation17_spill] sm:$0xff] }
 0x362   : >> { %v1473_v7 = vadd.f32 %v1471_v52, %v1459_v25  ;;  %v1474_v61 = vadd.f32 %v1472_v55, %v1460_v27  ;;  %v3310_v55 = vld [vmem:[#allocation16_spill] sm:$0xff] }
 0x363   : >> { %v1489_v13 = vsel %vm968_vm7, %v1487_v3, %v1488_v10  ;;  %v1490_v34 = vsel %vm968_vm7, %v1488_v10, %v1487_v3  ;;  %v1527_v3 = vmul.f32 %v3004_v28, %v3311_v11  ;;  %v3312_v10 = vld [vmem:[#allocation20_spill] sm:$0xff] }
 0x364   : >> { %v1477_v4 = vadd.f32 %v1475_v63, %v1473_v7  ;;  %v1478_v49 = vadd.f32 %v1476_v9, %v1474_v61  ;;  %v1498_v5 = vpop.permute.xlu1 %1497  ;;  %v1491_v24 = vmul.f32 %v1489_v13, %v2845_v62  ;;  %v1492_v8 = vmul.f32 %v1490_v34, %v2855_v42  ;;  %v2114_v34 = vld [vmem:[%s1237_s30] ss:$0 sm:$0xff]  ;;  %s2384_s30 = smov 112  }
 0x365   : >> { %v1502_v23 = vrot.slane %v1498_v5, 3  ;;  %v1528_v7 = vmul.f32 %v3008_v15, %v3312_v10  ;;  %v3314_v5 = vld [vmem:[#allocation21_spill] sm:$0xff] }
 0x366   : >> { %v1493_v56 = vadd.f32 %v1491_v24, %v1477_v4  ;;  %v1494_v59 = vadd.f32 %v1492_v8, %v1478_v49  ;;  %v3313_v4 = vld [vmem:[#allocation19_spill] sm:$0xff] }
 0x367   : >> { %v1503_v30 = vsel %vm860_vm3, %v1501_v19, %v1502_v23  ;;  %v1504_v54 = vsel %vm860_vm3, %v1502_v23, %v1501_v19 }
 0x368   : >> { %v1505_v45 = vmul.f32 %v1503_v30, %v2849_v0  ;;  %v1506_v40 = vmul.f32 %v1504_v54, %v2853_v1  ;;  %v1512_v26 = vpop.permute.xlu1 %1511 }
 0x369   : >> { %v1516_v37 = vrot.slane %v1512_v26, 4 }
 0x36a   : >> { %v1507_v25 = vadd.f32 %v1505_v45, %v1493_v56  ;;  %v1508_v27 = vadd.f32 %v1506_v40, %v1494_v59 }
 0x36b   : >> { %v1517_v51 = vsel %vm885_vm5, %v1515_v41, %v1516_v37  ;;  %v1518_v6 = vsel %vm885_vm5, %v1516_v37, %v1515_v41 }
 0x36c   : >> { %v1519_v52 = vmul.f32 %v1517_v51, %v2859_v2  ;;  %v1520_v18 = vmul.f32 %v1518_v6, %v3310_v55 }
 0x36e   : >> { %v1521_v61 = vadd.f32 %v1519_v52, %v1507_v25  ;;  %v1522_v63 = vadd.f32 %v1520_v18, %v1508_v27 }
 0x370   : >> { %v1529_v9 = vadd.f32 %v1527_v3, %v1521_v61  ;;  %v1530_v13 = vadd.f32 %v1528_v7, %v1522_v63 }
 0x372   : >> { %v1531_v49 = vadd.f32 %v1529_v9, %v3313_v4  ;;  %v1532_v19 = vadd.f32 %v1530_v13, %v3314_v5 }
 0x374   : >> { %v1537_v23 = vadd.f32 %v2114_v34, %v1531_v49  ;;  %v1538_v24 = vadd.f32 %v2114_v34, %v1532_v19 }
 0x376   : >> { %v2115_v8 = vmul.f32 -1.442695, %v1537_v23  ;;  %v2116_v28 = vmul.f32 -1.442695, %v1538_v24 }
 0x378   : >> { %2296 = vpow2.f32 %v2115_v8 }
 0x379   : >> { %2298 = vpow2.f32 %v2116_v28  ;;  %v3315_v28 = vmov 1  }
 0x382   : >> { %v2297_v15 = vpop.eup %2296 }
 0x383   : >> { %v2299_v43 = vpop.eup %2298  ;;  %v1545_v30 = vadd.f32 1.0, %v2297_v15  ;;  %v2373_v15 = vmov 5  }
 0x384   : >> { %v1546_v54 = vadd.f32 1.0, %v2299_v43  ;;  %v3316_v43 = vmov 2  }
 0x385   : >> { %2300 = vrcp.f32 %v1545_v30  ;;  %v2374_v30 = vmov 6  }
 0x386   : >> { %2302 = vrcp.f32 %v1546_v54  ;;  %v3317_v54 = vmov 3  }
 0x38f   : >> { %v2301_v45 = vpop.eup %2300 }
 0x390   : >> { %v2303_v40 = vpop.eup %2302  ;;  %v3086_v26 = vmul.f32 %v2301_v45, %v1537_v23  ;;  %v2375_v45 = vmov 7  }
 0x391   : >> { %v3088_v41 = vmul.f32 %v2303_v40, %v1538_v24  ;;  %v2376_v40 = vmov 4  }
 0x393   : >> { %v1553_v37 = vpack.c.bf16 %v3088_v41, %v3086_v26 }
 0x395   : >> { %2168 = vmatmul.mubr.msk.bf16.vlgmr.msra.gmra.mrb[0].mxu0 %vm1051_vm1, %v1553_v37  ;;  %v1923_v37 = vld [vmem:[%s1922_s19] sm:$0x1] }
 0x396   : >> { %2180 = vpush %v1923_v37 }
 0x468   : >> { %v1591_v56 = vpop.f32.mrb[0].mxu0 }
 0x469   : >> { %v2169_v59 = vpop.f32.mrb[1].mxu0  ;;  %v1599_v51 = vsel %vm1598_vm9, %v1591_v56, -inf }
 0x46a   : >> { %1600 = vmax.xlane.f32.xlu0 %v1599_v51  ;;  %v1594_v6 = vpop.f32.mrb[2].mxu0 }
 0x46b   : >> { %v2170_v25 = vpop.f32.mrb[3].mxu0  ;;  %v1602_v27 = vsel %vm1598_vm9, %v1594_v6, -inf }
 0x46c   : >> { %1603 = vmax.xlane.f32.xlu1 %v1602_v27 }
 0x4f7   : >> { %v1601_v52 = vpop.xlane.xlu0 %1600 }
 0x4f8   : >> { %v1605_v18 = vsub.f32 %v1591_v56, %v1601_v52 }
 0x4f9   : >> { %v1604_v3 = vpop.xlane.xlu1 %1603 }
 0x4fa   : >> { %v1607_v7 = vmul.f32 1.442695, %v1605_v18  ;;  %v1606_v61 = vsub.f32 %v1594_v6, %v1604_v3  ;;  %v3318_v3 = vld [vmem:[#allocation18_spill] sm:$0xff] }
 0x4fc   : >> { %2304 = vpow2.f32 %v1607_v7  ;;  %v1609_v63 = vmul.f32 1.442695, %v1606_v61  ;;  %v1648_v7 = vrot.slane %v3318_v3, %v2678_v33  ;;  %v1634_v61 = vrot.slane %v3318_v3, %v2684_v35 }
 0x4fe   : >> { %2306 = vpow2.f32 %v1609_v63  ;;  %v1664_v63 = vrot.slane %v3318_v3, %v2689_v38 }
 0x506   : >> { %v2305_v9 = vpop.eup %2304 }
 0x507   : >> { %v1611_v13 = vsel %vm1598_vm9, %v2305_v9, 0.0 }
 0x508   : >> { %v2307_v34 = vpop.eup %2306  ;;  %1612 = vadd.xlane.f32.xlu0 %v1611_v13  ;;  %v1680_v13 = vrot.slane %v3318_v3, %v2695_v44 }
 0x509   : >> { %v1614_v4 = vsel %vm1598_vm9, %v2307_v34, 0.0 }
 0x50c   : >> { %1615 = vadd.xlane.f32.xlu0 %v1614_v4 }
 0x595   : >> { %v1613_v49 = vpop.xlane.xlu0 %1612 }
 0x596   : >> { %2308 = vrcp.f32 %v1613_v49 }
 0x599   : >> { %v1616_v5 = vpop.xlane.xlu0 %1615 }
 0x59a   : >> { %2310 = vrcp.f32 %v1616_v5  ;;  %v3319_v5 = vld [vmem:[#allocation3_spill] sm:$0xff] }
 0x5a0   : >> { %v2309_v19 = vpop.eup %2308 }
 0x5a1   : >> { %v1619_v23 = vmul.f32 %v2309_v19, %v2305_v9  ;;  %v1696_v19 = vrot.slane %v3318_v3, %v3319_v5 }
 0x5a3   : >> { %1623 = vperm.xlu1 %2280, %v1619_v23  }
 0x5a4   : >> { %v2311_v24 = vpop.eup %2310 }
 0x5a5   : >> { %v1620_v8 = vmul.f32 %v2311_v24, %v2307_v34 }
 0x5a7   : >> { %2281 = vset.pattern.permute.xlu1 %v3315_v28  ;;  %1628 = vperm.xlu0 %2285, %v1620_v8  }
 0x5a8   : >> { %1638 = vperm.xlu1 %2281, %v1619_v23  }
 0x5ab   : >> { %2286 = vset.pattern.permute.xlu0 %v2373_v15 }
 0x5ac   : >> { %2282 = vset.pattern.permute.xlu1 %v3316_v43  ;;  %1702 = vperm.xlu0 %2286, %v1619_v23  }
 0x5ad   : >> { %1654 = vperm.xlu1 %2282, %v1619_v23  }
 0x5b0   : >> { %2293 = vset.pattern.permute.xlu0 %v2374_v30 }
 0x5b1   : >> { %2283 = vset.pattern.permute.xlu1 %v3317_v54  ;;  %1722 = vperm.xlu0 %2293, %v1620_v8  }
 0x5b2   : >> { %1670 = vperm.xlu1 %2283, %v1619_v23  }
 0x5b5   : >> { %2295 = vset.pattern.permute.xlu0 %v2375_v45 }
 0x5b6   : >> { %2284 = vset.pattern.permute.xlu1 %v2376_v40  ;;  %1930 = vrot.lane.b32.xlu0 %v1923_v37, %s2377_s23 }
 0x5b7   : >> { %1686 = vperm.xlu1 %2284, %v1619_v23  }
 0x5bb   : >> { %2287 = vset.pattern.permute.xlu1 %v2374_v30 }
 0x5bc   : >> { %1718 = vperm.xlu1 %2287, %v1619_v23  }
 0x5c0   : >> { %2288 = vset.pattern.permute.xlu1 %v3315_v28 }
 0x5c1   : >> { %1642 = vperm.xlu1 %2288, %v1620_v8  }
 0x5c5   : >> { %2289 = vset.pattern.permute.xlu1 %v3316_v43 }
 0x5c6   : >> { %1658 = vperm.xlu1 %2289, %v1620_v8  }
 0x5ca   : >> { %2290 = vset.pattern.permute.xlu1 %v3317_v54 }
 0x5cb   : >> { %1674 = vperm.xlu1 %2290, %v1620_v8  }
 0x5cf   : >> { %2291 = vset.pattern.permute.xlu1 %v2376_v40  ;;  %v3320_v40 = vld [vmem:[#allocation2_spill] sm:$0xff] }
 0x5d0   : >> { %1690 = vperm.xlu1 %2291, %v1620_v8   ;;  %v1712_v37 = vrot.slane %v3318_v3, %v3320_v40 }
 0x5d4   : >> { %2292 = vset.pattern.permute.xlu1 %v2373_v15 }
 0x5d5   : >> { %1706 = vperm.xlu1 %2292, %v1620_v8  }
 0x5d9   : >> { %2294 = vset.pattern.permute.xlu1 %v2375_v45 }
 0x5da   : >> { %1734 = vperm.xlu1 %2294, %v1619_v23  }
 0x5de   : >> { %1738 = vperm.xlu1 %2294, %v1620_v8  }
 0x622   : >> { %v1624_v56 = vpop.permute.xlu1 %1623 }
 0x623   : >> { %v1635_v4 = vmul.f32 %v1634_v61, %v1624_v56 }
 0x626   : >> { %v1629_v23 = vpop.permute.xlu0 %1628 }
 0x627   : >> { %v1639_v59 = vpop.permute.xlu1 %1638  ;;  %v1636_v43 = vmul.f32 %v1634_v61, %v1629_v23 }
 0x628   : >> { %v1649_v9 = vmul.f32 %v1648_v7, %v1639_v59 }
 0x62a   : >> { %v1651_v24 = vadd.f32 %v1649_v9, %v1635_v4 }
 0x62b   : >> { %v1703_v56 = vpop.permute.xlu0 %1702 }
 0x62c   : >> { %v1655_v51 = vpop.permute.xlu1 %1654 }
 0x62d   : >> { %v1665_v49 = vmul.f32 %v1664_v63, %v1655_v51 }
 0x62f   : >> { %v1667_v30 = vadd.f32 %v1665_v49, %v1651_v24 }
 0x630   : >> { %v1723_v4 = vpop.permute.xlu0 %1722 }
 0x631   : >> { %v1671_v6 = vpop.permute.xlu1 %1670 }
 0x632   : >> { %v1681_v8 = vmul.f32 %v1680_v13, %v1671_v6  ;;  %v1728_v6 = vrot.slane %v3318_v3, %v3321_v29 }
 0x634   : >> { %v1683_v59 = vadd.f32 %v1681_v8, %v1667_v30  ;;  %v1730_v23 = vmul.f32 %v1728_v6, %v1723_v4 }
 0x636   : >> { %v1687_v25 = vpop.permute.xlu1 %1686 }
 0x637   : >> { %v1697_v54 = vmul.f32 %v1696_v19, %v1687_v25  ;;  %v1744_v25 = vrot.slane %v3318_v3, %v2727_v12 }
 0x639   : >> { %v1699_v51 = vadd.f32 %v1697_v54, %v1683_v59 }
 0x63b   : >> { %v1719_v27 = vpop.permute.xlu1 %1718 }
 0x640   : >> { %v1643_v52 = vpop.permute.xlu1 %1642 }
 0x641   : >> { %v1650_v28 = vmul.f32 %v1648_v7, %v1643_v52  ;;  %v1713_v52 = vmul.f32 %v1712_v37, %v1703_v56 }
 0x643   : >> { %v1652_v16 = vadd.f32 %v1650_v28, %v1636_v43 }
 0x645   : >> { %v1659_v18 = vpop.permute.xlu1 %1658 }
 0x646   : >> { %v1666_v45 = vmul.f32 %v1664_v63, %v1659_v18  ;;  %v1715_v18 = vadd.f32 %v1713_v52, %v1699_v51  ;;  %v1729_v63 = vmul.f32 %v1728_v6, %v1719_v27  ;;  %v1931_v27 = vpop.permute.xlu0 %1930 }
 0x647   : >> { %2182 = vpush %v1931_v27 }
 0x648   : >> { %v1668_v21 = vadd.f32 %v1666_v45, %v1652_v16  ;;  %v1731_v16 = vadd.f32 %v1729_v63, %v1715_v18 }
 0x64a   : >> { %v1675_v34 = vpop.permute.xlu1 %1674 }
 0x64b   : >> { %v1682_v17 = vmul.f32 %v1680_v13, %v1675_v34 }
 0x64d   : >> { %v1684_v7 = vadd.f32 %v1682_v17, %v1668_v21 }
 0x64f   : >> { %v1691_v15 = vpop.permute.xlu1 %1690 }
 0x650   : >> { %v1698_v22 = vmul.f32 %v1696_v19, %v1691_v15 }
 0x652   : >> { %v1700_v9 = vadd.f32 %v1698_v22, %v1684_v7 }
 0x654   : >> { %v1707_v5 = vpop.permute.xlu1 %1706 }
 0x655   : >> { %v1714_v61 = vmul.f32 %v1712_v37, %v1707_v5 }
 0x657   : >> { %v1716_v13 = vadd.f32 %v1714_v61, %v1700_v9 }
 0x659   : >> { %v1735_v49 = vpop.permute.xlu1 %1734  ;;  %v1732_v8 = vadd.f32 %v1730_v23, %v1716_v13 }
 0x65a   : >> { %v1745_v34 = vmul.f32 %v1744_v25, %v1735_v49 }
 0x65c   : >> { %v1747_v24 = vadd.f32 %v1745_v34, %v1731_v16 }
 0x65d   : >> { %v1739_v19 = vpop.permute.xlu1 %1738 }
 0x65e   : >> { %v1746_v28 = vmul.f32 %v1744_v25, %v1739_v19  ;;  %v1749_v17 = vadd.f32 %v1747_v24, %v3086_v26 }
 0x660   : >> { %v1748_v29 = vadd.f32 %v1746_v28, %v1732_v8 }
 0x662   : >> { %v1750_v21 = vadd.f32 %v1748_v29, %v3088_v41 }
 0x664   : >> { %v1751_v15 = vpack.c.bf16 %v1750_v21, %v1749_v17 }
 0x666   : >> { %2176 = vmatmul.mubr.msk.bf16.vlgmr.msra.gmra.mrb[0].mxu1 %vm1051_vm1, %v1751_v15 }
 0x739   : >> { %v1789_v22 = vpop.f32.mrb[0].mxu1 }
 0x73a   : >> { %1804 = vrot.lane.b32.xlu1 %v1789_v22, %s2378_s1  ;;  %v2177_v43 = vpop.f32.mrb[1].mxu1  ;;  %v1796_v45 = vrot.slane %v1789_v22, 3  ;;  %v1846_v37 = vmul.f32 %v1789_v22, %v2851_v48 }
 0x73b   : >> { %v1792_v30 = vpop.f32.mrb[2].mxu1 }
 0x73c   : >> { %1806 = vrot.lane.b32.xlu0 %v1792_v30, %s2378_s1  ;;  %v2178_v54 = vpop.f32.mrb[3].mxu1  ;;  %v1797_v40 = vrot.slane %v1792_v30, 3  ;;  %v1847_v59 = vmul.f32 %v1792_v30, %v2841_v58 }
 0x73e   : >> { %1818 = vrot.lane.b32.xlu1 %v1789_v22, %s2379_s26  ;;  %v1798_v26 = vsel %vm860_vm3, %v1796_v45, %v1797_v40  ;;  %v1799_v41 = vsel %vm860_vm3, %v1797_v40, %v1796_v45 }
 0x73f   : >> { %v1800_v29 = vmul.f32 %v1799_v41, %v3308_v14  ;;  %v1801_v43 = vmul.f32 %v1798_v26, %v3309_v20 }
 0x740   : >> { %1820 = vrot.lane.b32.xlu0 %v1792_v30, %s2379_s26 }
 0x742   : >> { %1832 = vrot.lane.b32.xlu1 %v1789_v22, %s2380_s28 }
 0x744   : >> { %1834 = vrot.lane.b32.xlu0 %v1792_v30, %s2380_s28 }
 0x746   : >> { %1858 = vrot.lane.b32.xlu1 %v1789_v22, %s2381_s25 }
 0x748   : >> { %1860 = vrot.lane.b32.xlu0 %v1792_v30, %s2381_s25 }
 0x74a   : >> { %1872 = vrot.lane.b32.xlu1 %v1789_v22, %s2382_s0 }
 0x74c   : >> { %1874 = vrot.lane.b32.xlu0 %v1792_v30, %s2382_s0 }
 0x74e   : >> { %1886 = vrot.lane.b32.xlu1 %v1789_v22, %s2383_s27 }
 0x750   : >> { %1888 = vrot.lane.b32.xlu0 %v1792_v30, %s2383_s27 }
 0x752   : >> { %1850 = vrot.lane.b32.xlu1 %v1846_v37, %s2384_s30 }
 0x754   : >> { %1852 = vrot.lane.b32.xlu0 %v1847_v59, %s2384_s30 }
 0x756   : >> { %1900 = vrot.lane.b32.xlu1 %v1789_v22, %s2369_s29 }
 0x758   : >> { %1902 = vrot.lane.b32.xlu0 %v1792_v30, %s2369_s29  ;;  %s2181_s29 = spop %2180 }
 0x759   : >> { %s2183_s18 = spop %2182 }
 0x7ac   : >> { %v1805_v56 = vpop.permute.xlu1 %1804 }
 0x7ad   : >> { %v1810_v61 = vrot.slane %v1805_v56, 4 }
 0x7ae   : >> { %v1807_v51 = vpop.permute.xlu0 %1806 }
 0x7af   : >> { %v1811_v52 = vrot.slane %v1807_v51, 4 }
 0x7b0   : >> { %v1819_v5 = vpop.permute.xlu1 %1818 }
 0x7b1   : >> { %v1813_v63 = vsel %vm885_vm5, %v1811_v52, %v1810_v61  ;;  %v1824_v9 = vrot.slane %v1819_v5, 5  ;;  %v1812_v13 = vsel %vm885_vm5, %v1810_v61, %v1811_v52 }
 0x7b2   : >> { %v1821_v6 = vpop.permute.xlu0 %1820  ;;  %v1814_v19 = vmul.f32 %v1813_v63, %v2843_v60  ;;  %v1815_v17 = vmul.f32 %v1812_v13, %v3306_v46 }
 0x7b3   : >> { %v1825_v25 = vrot.slane %v1821_v6, 5 }
 0x7b4   : >> { %v1833_v7 = vpop.permute.xlu1 %1832  ;;  %v1816_v30 = vadd.f32 %v1814_v19, %v1800_v29  ;;  %v1817_v59 = vadd.f32 %v1815_v17, %v1801_v43 }
 0x7b5   : >> { %v1827_v34 = vsel %vm908_vm4, %v1825_v25, %v1824_v9  ;;  %v1838_v23 = vrot.slane %v1833_v7, 7  ;;  %v1826_v24 = vsel %vm908_vm4, %v1824_v9, %v1825_v25 }
 0x7b6   : >> { %v1835_v18 = vpop.permute.xlu0 %1834  ;;  %v1828_v21 = vmul.f32 %v1827_v34, %v2835_v50  ;;  %v1829_v54 = vmul.f32 %v1826_v24, %v2847_v47  ;;  %v1970_v50 = vrot.slane (%p1231_p4), %v1942_v31, %v2678_v33 }
 0x7b7   : >> { %v1839_v4 = vrot.slane %v1835_v18, 7 }
 0x7b8   : >> { %v1859_v49 = vpop.permute.xlu1 %1858  ;;  %v1830_v51 = vadd.f32 %v1828_v21, %v1816_v30  ;;  %v1831_v61 = vadd.f32 %v1829_v54, %v1817_v59 }
 0x7b9   : >> { %v1841_v8 = vsel %vm931_vm6, %v1839_v4, %v1838_v23  ;;  %v1840_v15 = vsel %vm931_vm6, %v1838_v23, %v1839_v4  ;;  %v1864_v40 = vrot.slane %v1859_v49, 1 }
 0x7ba   : >> { %v1861_v16 = vpop.permute.xlu0 %1860  ;;  %v1842_v45 = vmul.f32 %v1841_v8, %v2837_v53  ;;  %v1843_v41 = vmul.f32 %v1840_v15, %v2839_v57  ;;  %v1956_v53 = vrot.slane (%p1231_p4), %v1942_v31, %v2684_v35  ;;  %v1986_v57 = vrot.slane (%p1231_p4), %v1942_v31, %v2689_v38 }
 0x7bb   : >> { %v1865_v27 = vrot.slane %v1861_v16, 1 }
 0x7bc   : >> { %v1873_v28 = vpop.permute.xlu1 %1872  ;;  %v1844_v7 = vadd.f32 %v1842_v45, %v1830_v51  ;;  %v1845_v49 = vadd.f32 %v1843_v41, %v1831_v61  ;;  %v1933_v61 = vstv %s2183_s18 }
 0x7bd   : >> { %v1866_v5 = vsel %vm968_vm7, %v1864_v40, %v1865_v27  ;;  %v1878_v52 = vrot.slane %v1873_v28, 3  ;;  %v1867_v26 = vsel %vm968_vm7, %v1865_v27, %v1864_v40 }
 0x7be   : >> { %v1875_v22 = vpop.permute.xlu0 %1874  ;;  %v1868_v63 = vmul.f32 %v1866_v5, %v2845_v62  ;;  %v1869_v16 = vmul.f32 %v1867_v26, %v2855_v42  ;;  %v3322_v26 = vld [vmem:[#allocation23_spill] sm:$0xff] }
 0x7bf   : >> { %v1879_v56 = vrot.slane %v1875_v22, 3 }
 0x7c0   : >> { %v1887_v37 = vpop.permute.xlu1 %1886 }
 0x7c1   : >> { %v1880_v9 = vsel %vm860_vm3, %v1878_v52, %v1879_v56  ;;  %v1881_v13 = vsel %vm860_vm3, %v1879_v56, %v1878_v52  ;;  %v1892_v34 = vrot.slane %v1887_v37, 4 }
 0x7c2   : >> { %v1889_v6 = vpop.permute.xlu0 %1888  ;;  %v1882_v8 = vmul.f32 %v1880_v9, %v2849_v0  ;;  %v1883_v17 = vmul.f32 %v1881_v13, %v2853_v1  ;;  %v3324_v9 = vld [vmem:[#allocation11_spill] sm:$0xff] }
 0x7c3   : >> { %v1893_v25 = vrot.slane %v1889_v6, 4  ;;  %v1926_v6 = vstv %s2181_s29 }
 0x7c4   : >> { %v1851_v18 = vpop.permute.xlu1 %1850 }
 0x7c5   : >> { %v1856_v4 = vadd.f32 %v1851_v18, %v1844_v7  ;;  %v1895_v28 = vsel %vm885_vm5, %v1893_v25, %v1892_v34  ;;  %v1894_v21 = vsel %vm885_vm5, %v1892_v34, %v1893_v25  ;;  %v1928_v25 = vmul.f32 %v3322_v26, %v1926_v6  ;;  %v3323_v18 = vld [vmem:[#allocation22_spill] sm:$0xff] }
 0x7c6   : >> { %v1853_v23 = vpop.permute.xlu0 %1852  ;;  %v1897_v43 = vmul.f32 %v1895_v28, %v3310_v55  ;;  %v1896_v40 = vmul.f32 %v1894_v21, %v2859_v2  ;;  %v3330_v21 = vmov (%p1231_p4), 3   ;;  %v2002_v2 = vrot.slane (%p1231_p4), %v1942_v31, %v2695_v44 }
 0x7c7   : >> { %v1870_v19 = vadd.f32 %v1868_v63, %v1856_v4  ;;  %v1857_v24 = vadd.f32 %v1853_v23, %v1845_v49  ;;  %v1929_v63 = vmul.f32 %v3323_v18, %v1926_v6 }
 0x7c8   : >> { %v1901_v29 = vpop.permute.xlu1 %1900 }
 0x7c9   : >> { %v1871_v15 = vadd.f32 %v1869_v16, %v1857_v24  ;;  %v1884_v27 = vadd.f32 %v1882_v8, %v1870_v19  ;;  %v1906_v54 = vrot.slane %v1901_v29, 5  ;;  %v3328_v8 = vmov (%p1231_p4), 0  }
 0x7ca   : >> { %v1903_v22 = vpop.permute.xlu0 %1902  ;;  %2312 = vset.pattern.permute.xlu0 (%p1231_p4), %v3328_v8 }
 0x7cb   : >> { %v1885_v30 = vadd.f32 %v1883_v17, %v1871_v15  ;;  %v1907_v45 = vrot.slane %v1903_v22, 5  ;;  %v1898_v5 = vadd.f32 %v1896_v40, %v1884_v27  ;;  %v3329_v17 = vmov (%p1231_p4), 2  }
 0x7cd   : >> { %v1908_v37 = vsel %vm908_vm4, %v1906_v54, %v1907_v45  ;;  %v1909_v59 = vsel %vm908_vm4, %v1907_v45, %v1906_v54  ;;  %v1899_v41 = vadd.f32 %v1897_v43, %v1885_v30 }
 0x7ce   : >> { %v1910_v56 = vmul.f32 %v1908_v37, %v3311_v11  ;;  %v1911_v51 = vmul.f32 %v1909_v59, %v3312_v10  ;;  %v2120_v10 = vld [vmem:[%s3226_s16] ss:$0 sm:$0xff] (%p1231_p4) }
 0x7d0   : >> { %v1912_v52 = vadd.f32 %v1910_v56, %v1898_v5  ;;  %v1913_v7 = vadd.f32 %v1911_v51, %v1899_v41 }
 0x7d2   : >> { %v1920_v4 = vadd.f32 %v3324_v9, %v1912_v52  ;;  %v1921_v49 = vadd.f32 %v3324_v9, %v1913_v7  ;;  %1233 = sbr.rel (!%p1231_p4) target bundleno = 586 (0x24a), region = 130 }
 0x7d4   : >> { %v1935_v13 = vmul.f32 %v1933_v61, %v1920_v4  ;;  %v1936_v34 = vmul.f32 %v1933_v61, %v1921_v49 }
 0x7d6   : >> { %v1937_v16 = vadd.f32 %v1935_v13, %v1928_v25   ;;  %v1938_v19 = vadd.f32 %v1936_v34, %v1929_v63  }
 0x7d8   : >> { %v3325_v24 = vmov %v1938_v19  ;;  %v3326_v23 = vmov %v1937_v16  ;;  %v1939_v28 = vmul.f32 (%p1231_p4), 5.4899807, %v1937_v16  ;;  %v1940_v29 = vmul.f32 (%p1231_p4), 5.4899807, %v1938_v19 }
 0x7d9   : > { %v3327_v23 = vmov 1  }
 0x7da   : > { %2313 = vset.pattern.permute.xlu1 %v3327_v23  ;;  %1945 = vperm.xlu0 %2312, %v1939_v28  }
 0x7db   : > { %1960 = vperm.xlu1 %2313, %v1939_v28  }
 0x7de   : > { %1950 = vperm.xlu0 %2312, %v1940_v29  }
 0x7df   : > { %1964 = vperm.xlu1 %2313, %v1940_v29  }
 0x7e2   : > { %2314 = vset.pattern.permute.xlu0 %v3329_v17 }
 0x7e3   : > { %2315 = vset.pattern.permute.xlu1 %v3329_v17  ;;  %1976 = vperm.xlu0 %2314, %v1939_v28  }
 0x7e4   : > { %1980 = vperm.xlu1 %2315, %v1940_v29  }
 0x7e7   : > { %2317 = vset.pattern.permute.xlu0 %v3330_v21 }
 0x7e8   : > { %2316 = vset.pattern.permute.xlu1 %v3330_v21  ;;  %1996 = vperm.xlu0 %2317, %v1940_v29  }
 0x7e9   : > { %1992 = vperm.xlu1 %2316, %v1939_v28  }
 0x859   : > { %v1946_v12 = vpop.permute.xlu0 %1945 }
 0x85a   : > { %v1961_v32 = vpop.permute.xlu1 %1960  ;;  %v1957_v60 = vmul.f32 %v1956_v53, %v1946_v12 }
 0x85b   : > { %v1971_v58 = vmul.f32 %v1970_v50, %v1961_v32 }
 0x85d   : > { %v1951_v39 = vpop.permute.xlu0 %1950  ;;  %v1973_v46 = vadd.f32 %v1971_v58, %v1957_v60 }
 0x85e   : > { %v1965_v36 = vpop.permute.xlu1 %1964  ;;  %v1958_v47 = vmul.f32 %v1956_v53, %v1951_v39 }
 0x85f   : > { %v1972_v62 = vmul.f32 %v1970_v50, %v1965_v36 }
 0x861   : > { %v1974_v14 = vadd.f32 %v1972_v62, %v1958_v47 }
 0x862   : > { %v1977_v48 = vpop.permute.xlu0 %1976 }
 0x863   : > { %v1981_v0 = vpop.permute.xlu1 %1980  ;;  %v1987_v42 = vmul.f32 %v1986_v57, %v1977_v48 }
 0x864   : > { %v1988_v1 = vmul.f32 %v1986_v57, %v1981_v0 }
 0x865   : > { %v1989_v35 = vadd.f32 %v1987_v42, %v1973_v46 }
 0x866   : > { %v1990_v55 = vadd.f32 %v1988_v1, %v1974_v14 }
 0x867   : > { %v1997_v33 = vpop.permute.xlu0 %1996 }
 0x868   : > { %v1993_v20 = vpop.permute.xlu1 %1992  ;;  %v2004_v38 = vmul.f32 %v2002_v2, %v1997_v33 }
 0x869   : > { %v2003_v11 = vmul.f32 %v2002_v2, %v1993_v20 }
 0x86a   : > { %v2006_v24 = vadd.f32 %v2004_v38, %v1990_v55 }
 0x86b   : > { %v2005_v3 = vadd.f32 %v2003_v11, %v1989_v35 }
 0x86c   : > { %v2014_v27 = vadd.f32 %v2120_v10, %v2006_v24 }
 0x86d   : > { %v2013_v15 = vadd.f32 %v2120_v10, %v2005_v3 }
 0x86e   : > { %2016 = vst [vmem:[%s2534_s20 + $0x8] sm:$0xff] %v2014_v27 }
 0x86f   : > { %2015 = vst [vmem:[%s2534_s20] sm:$0xff] %v2013_v15 }
 0x870 PF: > { %s27_s24 = sadd.s32 1, %s2336_s24  }
 0x871   : > { %p24_p5 = scmp.ge.s32.totalorder %s27_s24, 4  }
 0x873   :  { %26 = sbr.rel (!%p24_p5) target bundleno = 3 (0x3), region = 141 }

</bundles_post_ra>
